<compile_context>
chip_gen: v7x
topology: tpu7x:2x2x1
jax: 0.10.0
libtpu: 0.0.40
codegen_flags: <defaults>
</compile_context>

<pallas_src>
import jax
import jax.numpy as jnp
from jax import lax
from jax.experimental import pallas as pl
from jax.experimental.pallas import tpu as pltpu

ALPHA = 3.0       # FeatureReconstructionLoss(alpha=3.0) -> explicit cube below
EDGE_DROP = 0.3   # edge_drop ratio used by get_augmented_graph


# ---------------------------------------------------------------------------
# Kernel 1: masked-feature encoder + enc_dec projection + root zeroing.
#   grid = (N // TM, N // TK); K (last axis) accumulates the neighbor sum.
#   h[i_tile] = where(root, 0,
#                     ReLU(adj[i,:] @ (x_masked @ We_rel)
#                          + x_masked[i] @ We_root + be) @ Wed)
# ---------------------------------------------------------------------------
def encoder_kernel(adj_ref, xk_ref, rk_ref, xi_ref, ri_ref, mtok_ref,
                   we_rel_ref, we_root_ref, be_ref, wed_ref,
                   h_ref, acc_ref):
    k = pl.program_id(1)

    @pl.when(k == 0)
    def _():
        acc_ref[...] = jnp.zeros_like(acc_ref)

    # augmented_clone.x[root] = 0; augmented_clone.x[root] += reconstruction_mask
    xk = jnp.where(rk_ref[...] > 0.0, mtok_ref[...], xk_ref[...])
    # Reassociated propagation: project to F_OUT *before* the N x N contraction.
    xw_k = jnp.dot(xk, we_rel_ref[...], preferred_element_type=jnp.float32)
    acc_ref[...] += jnp.dot(adj_ref[...], xw_k.astype(jnp.bfloat16),
                            preferred_element_type=jnp.float32)

    @pl.when(k == pl.num_programs(1) - 1)
    def _():
        ri = ri_ref[...] > 0.0
        xi = jnp.where(ri, mtok_ref[...], xi_ref[...])
        # Synthetic encoder = single GraphConv(in_dim, out_dim) + ReLU.
        # TODO(synk): swap in the project's actual encoder architecture.
        h = (acc_ref[...]
             + jnp.dot(xi, we_root_ref[...], preferred_element_type=jnp.float32)
             + be_ref[...])
        h = jnp.maximum(h, 0.0)
        # reconstruction_enc_dec: Linear(out_dim, out_dim, bias=False)
        h = jnp.dot(h, wed_ref[...], preferred_element_type=jnp.float32)
        # h[root_node_indices] = 0
        h = jnp.where(ri, 0.0, h)
        h_ref[...] = h.astype(h_ref.dtype)


# ---------------------------------------------------------------------------
# Kernel 2: GraphConv decoder + scaled-cosine loss, anchor rows only.
#   grid = (N // TK,); accumulates agg = adj_root @ h over K tiles.
# ---------------------------------------------------------------------------
def decoder_loss_kernel(adjr_ref, h_ref, xt_ref, wd_rel_ref, bd_ref,
                        loss_ref, agg_ref):
    k = pl.program_id(0)

    @pl.when(k == 0)
    def _():
        agg_ref[...] = jnp.zeros_like(agg_ref)

    # Neighbor sum for the R anchor rows only: (R, TK) @ (TK, F_OUT).
    agg_ref[...] += jnp.dot(adjr_ref[...], h_ref[...].astype(jnp.bfloat16),
                            preferred_element_type=jnp.float32)

    @pl.when(k == pl.num_programs(0) - 1)
    def _():
        # PyG GraphConv at anchor rows: lin_rel(agg) + lin_root(h_root).
        # h[root] was zeroed in the encoder kernel and lin_root has no bias,
        # so the lin_root term is identically zero here and is skipped.
        x_pred = (jnp.dot(agg_ref[...], wd_rel_ref[...],
                          preferred_element_type=jnp.float32)
                  + bd_ref[...])
        xt = xt_ref[...]
        # Scaled cosine error, mean over anchor rows.
        dot = jnp.sum(xt * x_pred, axis=-1, keepdims=True)
        inv_t = lax.rsqrt(jnp.maximum(jnp.sum(xt * xt, axis=-1, keepdims=True),
                                      1e-24))
        inv_p = lax.rsqrt(jnp.maximum(jnp.sum(x_pred * x_pred, axis=-1,
                                              keepdims=True), 1e-24))
        d = jnp.maximum(1.0 - dot * inv_t * inv_p, 0.0)   # clamp: no NaN from pow
        per_node = d * d * d                               # alpha = 3.0
        loss_ref[0, 0] = jnp.sum(per_node) / jnp.float32(per_node.shape[0])


def feature_reconstruction(x, adj, root_idx, params, *, tm=128, tk=128):
    """Fused FeatureReconstruction forward.

    Args:
      x: (N, F_in) f32 node features.
      adj: (N, N) dense 0/1 adjacency (adj[dst, src] = 1) *after* edge drop.
      root_idx: (R,) int32 anchor-node indices.
      params: (mask_token, we_rel, we_root, be, wed, wd_rel, wd_root, bd).
    Returns:
      (loss device scalar, number of anchor nodes as a static int).
    """
    (mask_token, we_rel, we_root, be, wed, wd_rel, wd_root, bd) = params
    del wd_root   # lin_root(h[root]) == 0 exactly (h zeroed at roots, no bias)

    N, f_in = x.shape
    f_out = we_rel.shape[1]
    R = root_idx.shape[0]
    assert N % tm == 0 and N % tk == 0, "pad N to a multiple of the tile sizes"

    adj_bf16 = adj.astype(jnp.bfloat16)                      # 0/1 -> exact
    root_mask = jnp.zeros((N, 1), jnp.float32).at[root_idx, 0].set(1.0)
    adj_root = adj_bf16[root_idx, :]                         # (R, N), anchor rows
    x_root = x[root_idx, :]                                  # x_target (R, F_in)

    full2d = lambda i, k: (0, 0)

    enc_cost = pl.CostEstimate(
        flops=2 * N * N * f_out + 4 * N * f_in * f_out + 2 * N * f_out * f_out,
        transcendentals=0,
        bytes_accessed=adj_bf16.size * 2 + 2 * x.size * 4 + N * f_out * 4)

    # ---- stage 1: encoder + enc_dec + root zeroing -> h (N, F_OUT) ----
    h = pl.pallas_call(
        encoder_kernel,
        out_shape=jax.ShapeDtypeStruct((N, f_out), jnp.float32),
        grid_spec=pltpu.PrefetchScalarGridSpec(
            num_scalar_prefetch=0,
            grid=(N // tm, N // tk),
            in_specs=[
                pl.BlockSpec((tm, tk), lambda i, k: (i, k)),    # adj tile (bf16)
                pl.BlockSpec((tk, f_in), lambda i, k: (k, 0)),  # x rows, K block
                pl.BlockSpec((tk, 1), lambda i, k: (k, 0)),     # root mask, K block
                pl.BlockSpec((tm, f_in), lambda i, k: (i, 0)),  # x rows, I block
                pl.BlockSpec((tm, 1), lambda i, k: (i, 0)),     # root mask, I block
                pl.BlockSpec((1, f_in), full2d),                # reconstruction_mask
                pl.BlockSpec((f_in, f_out), full2d),            # We_rel
                pl.BlockSpec((f_in, f_out), full2d),            # We_root
                pl.BlockSpec((1, f_out), full2d),               # be
                pl.BlockSpec((f_out, f_out), full2d),           # Wed (enc_dec)
            ],
            out_specs=pl.BlockSpec((tm, f_out), lambda i, k: (i, 0)),
            scratch_shapes=[pltpu.VMEM((tm, f_out), jnp.float32)]),
        compiler_params=pltpu.CompilerParams(
            dimension_semantics=("parallel", "arbitrary"),
            vmem_limit_bytes=32 * 1024 * 1024),
        cost_estimate=enc_cost,
    )(adj_bf16, x, root_mask, x, root_mask, mask_token, we_rel, we_root, be, wed)

    # ---- stage 2: decoder + loss on anchor rows only ----
    loss = pl.pallas_call(
        decoder_loss_kernel,
        out_shape=jax.ShapeDtypeStruct((1, 1), jnp.float32),
        grid_spec=pltpu.PrefetchScalarGridSpec(
            num_scalar_prefetch=0,
            grid=(N // tk,),
            in_specs=[
                pl.BlockSpec((R, tk), lambda k: (0, k)),        # adj_root cols (bf16)
                pl.BlockSpec((tk, f_out), lambda k: (k, 0)),    # h, K block
                pl.BlockSpec((R, f_in), lambda k: (0, 0)),      # x_target
                pl.BlockSpec((f_out, f_in), lambda k: (0, 0)),  # Wd_rel (lin_rel)
                pl.BlockSpec((1, f_in), lambda k: (0, 0)),      # bd
            ],
            out_specs=pl.BlockSpec((1, 1), lambda k: (0, 0)),
            scratch_shapes=[pltpu.VMEM((R, f_out), jnp.float32)]),
        compiler_params=pltpu.CompilerParams(
            dimension_semantics=("arbitrary",),
            vmem_limit_bytes=32 * 1024 * 1024),
    )(adj_root, h, x_root, wd_rel, bd)

    return loss[0, 0], R


def _linear_init(key, fan_in, shape):
    """Deterministic PyTorch-default-style uniform(-1/sqrt(fan_in), 1/sqrt(fan_in))."""
    bound = 1.0 / (fan_in ** 0.5)
    return jax.random.uniform(key, shape, jnp.float32, -bound, bound)


if __name__ == "__main__":
    N, F_IN, F_OUT = 256, 128, 128   # nodes, encoder.in_dim, encoder.out_dim
    N_ROOTS = 32                     # anchor nodes in the batch
    TM = TK = 128                    # adj tile sizes (grid = (2, 2))

    key = jax.random.PRNGKey(0)
    ks = jax.random.split(key, 12)

    # Node features and a random directed graph (row = dst, col = src).
    x = jax.random.normal(ks[0], (N, F_IN), jnp.float32)
    adj_full = jax.random.uniform(ks[1], (N, N)) < 0.15
    # get_augmented_graph edge drop (ratio 0.3).
    # TODO(synk): at large N, generate the drop mask in-kernel with
    # pltpu.prng_random_bits to avoid materializing an extra N^2 array.
    keep = jax.random.uniform(ks[2], (N, N)) > EDGE_DROP
    adj = (adj_full & keep).astype(jnp.bfloat16)   # 0/1 -> exact in bf16

    # Anchor (root) node indices.
    root_idx = jnp.arange(N_ROOTS, dtype=jnp.int32)

    # ---- parameters (deterministic, per module __init__ shapes) ----
    mask_token = jnp.zeros((1, F_IN), jnp.float32)            # torch.zeros(1, in_dim)
    we_rel = _linear_init(ks[3], F_IN, (F_IN, F_OUT))         # synthetic encoder
    we_root = _linear_init(ks[4], F_IN, (F_IN, F_OUT))
    be = _linear_init(ks[5], F_IN, (1, F_OUT))
    wed = _linear_init(ks[6], F_OUT, (F_OUT, F_OUT))          # Linear(out,out,bias=False), pre-T
    wd_rel = _linear_init(ks[7], F_OUT, (F_OUT, F_IN))        # GraphConv(out_dim,in_dim) lin_rel, pre-T
    wd_root = _linear_init(ks[8], F_OUT, (F_OUT, F_IN))       # lin_root (contributes 0: h[root]=0)
    bd = _linear_init(ks[9], F_OUT, (1, F_IN))

    params = (mask_token, we_rel, we_root, be, wed, wd_rel, wd_root, bd)

    loss, count = feature_reconstruction(x, adj, root_idx, params, tm=TM, tk=TK)
    jax.block_until_ready(loss)
    print("KERNEL_OK")
</pallas_src>

<mosaic_0001>
module attributes {stable_mosaic.version = 11 : i64} {
  func.func @encoder_kernel(%arg0: i32, %arg1: i32, %arg2: memref<128x128xbf16, #tpu.memory_space<vmem>>, %arg3: memref<128x128xf32, #tpu.memory_space<vmem>>, %arg4: memref<128x1xf32, #tpu.memory_space<vmem>>, %arg5: memref<128x128xf32, #tpu.memory_space<vmem>>, %arg6: memref<128x1xf32, #tpu.memory_space<vmem>>, %arg7: memref<1x128xf32, #tpu.memory_space<vmem>>, %arg8: memref<128x128xf32, #tpu.memory_space<vmem>>, %arg9: memref<128x128xf32, #tpu.memory_space<vmem>>, %arg10: memref<1x128xf32, #tpu.memory_space<vmem>>, %arg11: memref<128x128xf32, #tpu.memory_space<vmem>>, %arg12: memref<128x128xf32, #tpu.memory_space<vmem>>, %arg13: memref<128x128xf32, #tpu.memory_space<vmem>>) attributes {dimension_semantics = [#tpu.dimension_semantics<parallel>, #tpu.dimension_semantics<arbitrary>], iteration_bounds = array<i64: 2, 2>, scalar_prefetch = 0 : i64, scratch_operands = 1 : i64, tpu.core_type = #tpu.core_type<tc>, window_params = [{transform_indices = @transform_0, window_bounds = array<i64: 128, 128>}, {transform_indices = @transform_1, window_bounds = array<i64: 128, 128>}, {transform_indices = @transform_2, window_bounds = array<i64: 128, 1>}, {transform_indices = @transform_3, window_bounds = array<i64: 128, 128>}, {transform_indices = @transform_4, window_bounds = array<i64: 128, 1>}, {pipeline_mode = #tpu.pipeline_mode<synchronous>, transform_indices = @transform_5, window_bounds = array<i64: 1, 128>}, {pipeline_mode = #tpu.pipeline_mode<synchronous>, transform_indices = @transform_6, window_bounds = array<i64: 128, 128>}, {pipeline_mode = #tpu.pipeline_mode<synchronous>, transform_indices = @transform_7, window_bounds = array<i64: 128, 128>}, {pipeline_mode = #tpu.pipeline_mode<synchronous>, transform_indices = @transform_8, window_bounds = array<i64: 1, 128>}, {pipeline_mode = #tpu.pipeline_mode<synchronous>, transform_indices = @transform_9, window_bounds = array<i64: 128, 128>}, {transform_indices = @transform_10, window_bounds = array<i64: 128, 128>}]} {
    %c0_i32 = arith.constant 0 : i32
    %0 = arith.cmpi eq, %arg1, %c0_i32 : i32
    %1 = arith.extui %0 : i1 to i32
    %c0_i32_0 = arith.constant 0 : i32
    %2 = arith.cmpi ne, %1, %c0_i32_0 : i32
    scf.if %2 {
      %cst_17 = arith.constant 0.000000e+00 : f32
      %24 = vector.broadcast %cst_17 : f32 to vector<128x128xf32>
      %c0_18 = arith.constant 0 : index
      %c0_19 = arith.constant 0 : index
      %25 = vector.load %arg13[%c0_18, %c0_19] : memref<128x128xf32, #tpu.memory_space<vmem>>, vector<128x128xf32>
      tpu.vector_store %arg13[%c0_18, %c0_19], %24 {strides = array<i32>} : memref<128x128xf32, #tpu.memory_space<vmem>>, vector<128x128xf32>,
    } else {
    }
    %c0 = arith.constant 0 : index
    %c0_1 = arith.constant 0 : index
    %3 = vector.load %arg4[%c0, %c0_1] : memref<128x1xf32, #tpu.memory_space<vmem>>, vector<128x1xf32>
    %cst = arith.constant 0.000000e+00 : f32
    %4 = vector.broadcast %cst : f32 to vector<128x1xf32>
    %5 = arith.cmpf ogt, %3, %4 : vector<128x1xf32>
    %c0_2 = arith.constant 0 : index
    %c0_3 = arith.constant 0 : index
    %6 = vector.load %arg7[%c0_2, %c0_3] : memref<1x128xf32, #tpu.memory_space<vmem>>, vector<1x128xf32>
    %c0_4 = arith.constant 0 : index
    %c0_5 = arith.constant 0 : index
    %7 = vector.load %arg3[%c0_4, %c0_5] : memref<128x128xf32, #tpu.memory_space<vmem>>, vector<128x128xf32>
    %8 = vector.shape_cast %5 : vector<128x1xi1> to vector<128x1xi1>
    %9 = vector.broadcast %8 : vector<128x1xi1> to vector<128x128xi1>
    %10 = vector.shape_cast %6 : vector<1x128xf32> to vector<1x128xf32>
    %11 = vector.broadcast %10 : vector<1x128xf32> to vector<128x128xf32>
    %12 = arith.select %9, %11, %7 : vector<128x128xi1>, vector<128x128xf32>
    %c0_6 = arith.constant 0 : index
    %c0_7 = arith.constant 0 : index
    %13 = vector.load %arg8[%c0_6, %c0_7] : memref<128x128xf32, #tpu.memory_space<vmem>>, vector<128x128xf32>
    %cst_8 = arith.constant dense<0.000000e+00> : vector<128x128xf32>
    %14 = tpu.matmul %12, %13, %cst_8 {dimension_numbers = #tpu.dot_dimension_numbers<[1], [0], [0], [1], [0, 0, 1, 1], [], []>} : vector<128x128xf32>, vector<128x128xf32>, vector<128x128xf32> -> vector<128x128xf32>
    %c0_9 = arith.constant 0 : index
    %c0_10 = arith.constant 0 : index
    %15 = vector.load %arg13[%c0_9, %c0_10] : memref<128x128xf32, #tpu.memory_space<vmem>>, vector<128x128xf32>
    %c0_11 = arith.constant 0 : index
    %c0_12 = arith.constant 0 : index
    %16 = vector.load %arg2[%c0_11, %c0_12] : memref<128x128xbf16, #tpu.memory_space<vmem>>, vector<128x128xbf16>
    %17 = arith.truncf %14 : vector<128x128xf32> to vector<128x128xbf16>
    %cst_13 = arith.constant dense<0.000000e+00> : vector<128x128xf32>
    %18 = tpu.matmul %16, %17, %cst_13 {dimension_numbers = #tpu.dot_dimension_numbers<[1], [0], [0], [1], [0, 0, 1, 1], [], []>} : vector<128x128xbf16>, vector<128x128xbf16>, vector<128x128xf32> -> vector<128x128xf32>
    %19 = arith.addf %15, %18 : vector<128x128xf32>
    %c0_14 = arith.constant 0 : index
    %c0_15 = arith.constant 0 : index
    %20 = vector.load %arg13[%c0_14, %c0_15] : memref<128x128xf32, #tpu.memory_space<vmem>>, vector<128x128xf32>
    tpu.vector_store %arg13[%c0_14, %c0_15], %19 {strides = array<i32>} : memref<128x128xf32, #tpu.memory_space<vmem>>, vector<128x128xf32>,
    %c1_i32 = arith.constant 1 : i32
    %21 = arith.cmpi eq, %arg1, %c1_i32 : i32
    %22 = arith.extui %21 : i1 to i32
    %c0_i32_16 = arith.constant 0 : i32
    %23 = arith.cmpi ne, %22, %c0_i32_16 : i32
    scf.if %23 {
      %c0_17 = arith.constant 0 : index
      %c0_18 = arith.constant 0 : index
      %24 = vector.load %arg6[%c0_17, %c0_18] : memref<128x1xf32, #tpu.memory_space<vmem>>, vector<128x1xf32>
      %cst_19 = arith.constant 0.000000e+00 : f32
      %25 = vector.broadcast %cst_19 : f32 to vector<128x1xf32>
      %26 = arith.cmpf ogt, %24, %25 : vector<128x1xf32>
      %c0_20 = arith.constant 0 : index
      %c0_21 = arith.constant 0 : index
      %27 = vector.load %arg7[%c0_20, %c0_21] : memref<1x128xf32, #tpu.memory_space<vmem>>, vector<1x128xf32>
      %c0_22 = arith.constant 0 : index
      %c0_23 = arith.constant 0 : index
      %28 = vector.load %arg5[%c0_22, %c0_23] : memref<128x128xf32, #tpu.memory_space<vmem>>, vector<128x128xf32>
      %29 = vector.shape_cast %26 : vector<128x1xi1> to vector<128x1xi1>
      %30 = vector.broadcast %29 : vector<128x1xi1> to vector<128x128xi1>
      %31 = vector.shape_cast %27 : vector<1x128xf32> to vector<1x128xf32>
      %32 = vector.broadcast %31 : vector<1x128xf32> to vector<128x128xf32>
      %33 = arith.select %30, %32, %28 : vector<128x128xi1>, vector<128x128xf32>
      %c0_24 = arith.constant 0 : index
      %c0_25 = arith.constant 0 : index
      %34 = vector.load %arg13[%c0_24, %c0_25] : memref<128x128xf32, #tpu.memory_space<vmem>>, vector<128x128xf32>
      %c0_26 = arith.constant 0 : index
      %c0_27 = arith.constant 0 : index
      %35 = vector.load %arg9[%c0_26, %c0_27] : memref<128x128xf32, #tpu.memory_space<vmem>>, vector<128x128xf32>
      %cst_28 = arith.constant dense<0.000000e+00> : vector<128x128xf32>
      %36 = tpu.matmul %33, %35, %cst_28 {dimension_numbers = #tpu.dot_dimension_numbers<[1], [0], [0], [1], [0, 0, 1, 1], [], []>} : vector<128x128xf32>, vector<128x128xf32>, vector<128x128xf32> -> vector<128x128xf32>
      %37 = arith.addf %34, %36 : vector<128x128xf32>
      %c0_29 = arith.constant 0 : index
      %c0_30 = arith.constant 0 : index
      %38 = vector.load %arg10[%c0_29, %c0_30] : memref<1x128xf32, #tpu.memory_space<vmem>>, vector<1x128xf32>
      %39 = vector.broadcast %38 : vector<1x128xf32> to vector<128x128xf32>
      %40 = arith.addf %37, %39 : vector<128x128xf32>
      %cst_31 = arith.constant 0.000000e+00 : f32
      %41 = vector.broadcast %cst_31 : f32 to vector<128x128xf32>
      %42 = arith.maximumf %40, %41 : vector<128x128xf32>
      %c0_32 = arith.constant 0 : index
      %c0_33 = arith.constant 0 : index
      %43 = vector.load %arg11[%c0_32, %c0_33] : memref<128x128xf32, #tpu.memory_space<vmem>>, vector<128x128xf32>
      %cst_34 = arith.constant dense<0.000000e+00> : vector<128x128xf32>
      %44 = tpu.matmul %42, %43, %cst_34 {dimension_numbers = #tpu.dot_dimension_numbers<[1], [0], [0], [1], [0, 0, 1, 1], [], []>} : vector<128x128xf32>, vector<128x128xf32>, vector<128x128xf32> -> vector<128x128xf32>
      %cst_35 = arith.constant 0.000000e+00 : f32
      %45 = vector.shape_cast %26 : vector<128x1xi1> to vector<128x1xi1>
      %46 = vector.broadcast %45 : vector<128x1xi1> to vector<128x128xi1>
      %47 = vector.broadcast %cst_35 : f32 to vector<128x128xf32>
      %48 = arith.select %46, %47, %44 : vector<128x128xi1>, vector<128x128xf32>
      %c0_36 = arith.constant 0 : index
      %c0_37 = arith.constant 0 : index
      %49 = vector.load %arg12[%c0_36, %c0_37] : memref<128x128xf32, #tpu.memory_space<vmem>>, vector<128x128xf32>
      tpu.vector_store %arg12[%c0_36, %c0_37], %48 {strides = array<i32>} : memref<128x128xf32, #tpu.memory_space<vmem>>, vector<128x128xf32>,
    } else {
    }
    return
  }
  func.func @transform_0(%arg0: i32, %arg1: i32) -> (i32, i32) {
    %c0_i32 = arith.constant 0 : i32
    return %arg0, %arg1 : i32, i32
  }
  func.func @transform_1(%arg0: i32, %arg1: i32) -> (i32, i32) {
    %c0_i32 = arith.constant 0 : i32
    %c0_i32_0 = arith.constant 0 : i32
    return %arg1, %c0_i32 : i32, i32
  }
  func.func @transform_2(%arg0: i32, %arg1: i32) -> (i32, i32) {
    %c0_i32 = arith.constant 0 : i32
    %c0_i32_0 = arith.constant 0 : i32
    return %arg1, %c0_i32 : i32, i32
  }
  func.func @transform_3(%arg0: i32, %arg1: i32) -> (i32, i32) {
    %c0_i32 = arith.constant 0 : i32
    %c0_i32_0 = arith.constant 0 : i32
    return %arg0, %c0_i32 : i32, i32
  }
  func.func @transform_4(%arg0: i32, %arg1: i32) -> (i32, i32) {
    %c0_i32 = arith.constant 0 : i32
    %c0_i32_0 = arith.constant 0 : i32
    return %arg0, %c0_i32 : i32, i32
  }
  func.func @transform_5(%arg0: i32, %arg1: i32) -> (i32, i32) {
    %c0_i32 = arith.constant 0 : i32
    %c0_i32_0 = arith.constant 0 : i32
    %c0_i32_1 = arith.constant 0 : i32
    return %c0_i32, %c0_i32_0 : i32, i32
  }
  func.func @transform_6(%arg0: i32, %arg1: i32) -> (i32, i32) {
    %c0_i32 = arith.constant 0 : i32
    %c0_i32_0 = arith.constant 0 : i32
    %c0_i32_1 = arith.constant 0 : i32
    return %c0_i32, %c0_i32_0 : i32, i32
  }
  func.func @transform_7(%arg0: i32, %arg1: i32) -> (i32, i32) {
    %c0_i32 = arith.constant 0 : i32
    %c0_i32_0 = arith.constant 0 : i32
    %c0_i32_1 = arith.constant 0 : i32
    return %c0_i32, %c0_i32_0 : i32, i32
  }
  func.func @transform_8(%arg0: i32, %arg1: i32) -> (i32, i32) {
    %c0_i32 = arith.constant 0 : i32
    %c0_i32_0 = arith.constant 0 : i32
    %c0_i32_1 = arith.constant 0 : i32
    return %c0_i32, %c0_i32_0 : i32, i32
  }
  func.func @transform_9(%arg0: i32, %arg1: i32) -> (i32, i32) {
    %c0_i32 = arith.constant 0 : i32
    %c0_i32_0 = arith.constant 0 : i32
    %c0_i32_1 = arith.constant 0 : i32
    return %c0_i32, %c0_i32_0 : i32, i32
  }
  func.func @transform_10(%arg0: i32, %arg1: i32) -> (i32, i32) {
    %c0_i32 = arith.constant 0 : i32
    %c0_i32_0 = arith.constant 0 : i32
    return %arg0, %c0_i32 : i32, i32
  }
}

</mosaic_0001>

<bundles_post_ra>
// kernel: tpu_custom_call.1
= control target key start
LH: loop header
LB: loop body
LE: loop exit
PB: predicated region body
PF: predicated region fallthrough
CT: control target
= control target key end

     0   :  { %s3532_s0 = inlined_call_operand.vmem [shape: bf16[256,256], index: 0, kind: input, shape index: {}]   ;;  %s3533_s1 = inlined_call_operand.vmem [shape: f32[256,128], index: 1, kind: input, shape index: {}]   ;;  %s3534_s2 = inlined_call_operand.vmem [shape: f32[256,1], index: 2, kind: input, shape index: {}]   ;;  %s3535_s3 = inlined_call_operand.hbm [shape: f32[256,128], index: 3, kind: input, shape index: {}]   ;;  %s3536_s4 = inlined_call_operand.vmem [shape: f32[256,1], index: 4, kind: input, shape index: {}]   ;;  %s3537_s5 = inlined_call_operand.vmem [shape: f32[1,128], index: 5, kind: input, shape index: {}]   ;;  %s3538_s6 = inlined_call_operand.hbm [shape: f32[128,128], index: 6, kind: input, shape index: {}]   ;;  %s3539_s7 = inlined_call_operand.hbm [shape: f32[128,128], index: 7, kind: input, shape index: {}]   ;;  %s3540_s8 = inlined_call_operand.vmem [shape: f32[1,128], index: 8, kind: input, shape index: {}]   ;;  %s3541_s9 = inlined_call_operand.hbm [shape: f32[128,128], index: 9, kind: input, shape index: {}]   ;;  %s3542_s10 = inlined_call_operand.hbm [shape: f32[256,128], index: 10, kind: output, shape index: {}]  }
   0x1   :  { %3561 = sst [smem:[#allocation28_spill]] %s3532_s0 }
   0x2   :  { %3562 = sst [smem:[#allocation29_spill]] %s3533_s1 }
   0x3   :  { %3563 = sst [smem:[#allocation30_spill]] %s3534_s2 }
   0x4   :  { %3564 = sst [smem:[#allocation31_spill]] %s3535_s3 }
   0x5   :  { %3565 = sst [smem:[#allocation32_spill]] %s3536_s4 }
   0x6   :  { %3566 = sst [smem:[#allocation33_spill]] %s3537_s5 }
   0x7   :  { %3567 = sst [smem:[#allocation34_spill]] %s3540_s8 }
   0x8   :  { %3568 = sst [smem:[#allocation35_spill]] %s3542_s10 }
   0x9   :  { %15 = vsyncpa [#allocation5], 0 }
   0xa   :  { %17 = vsyncpa [#allocation5 + $0x1], 0 }
   0xb   :  { %18 = vsyncpa [#allocation8], 0 }
   0xc   :  { %19 = vsyncpa [#allocation11], 0 }
   0xd   :  { %20 = vsyncpa [#allocation6], 0 }
   0xe   :  { %22 = vsyncpa [#allocation6 + $0x1], 0  ;;  %s2844_s13 = smov 0   ;;  %s2846_s14 = smov 0  }
   0xf   :  { %s2848_s15 = smov 0   ;;  %s2850_s16 = smov 0  }
  0x10   :  { %s2852_s17 = smov 0   ;;  %s2854_s18 = smov 0  }
  0x11   :  { %s2856_s19 = smov 0   ;;  %s2858_s20 = smov 0  }
  0x12   :  { %s2860_s21 = smov 0   ;;  %s2862_s22 = smov 0  }
  0x13 LB: > { %3569 = sst [smem:[#allocation17_spill]] %s2737_s13  ;;  %s1942_s23 = sadd.s32 4294967295, %s2773_s22   ;;  %s2773_s22 = sphi %s2862_s22, %s28_s22   ;;  %s2769_s21 = sphi %s2860_s21, %s3626_s21   ;;  %s2765_s20 = sphi %s2858_s20, %s3625_s20   ;;  %s2761_s19 = sphi %s2856_s19, %s3624_s19   ;;  %s2757_s18 = sphi %s2854_s18, %s3623_s18   ;;  %s2753_s17 = sphi %s2852_s17, %s3622_s17   ;;  %s2749_s16 = sphi %s2850_s16, %s3621_s16   ;;  %s2745_s15 = sphi %s2848_s15, %s3620_s15   ;;  %s2741_s14 = sphi %s2846_s14, %s3619_s14   ;;  %s2737_s13 = sphi %s2844_s13, %s3618_s13  }
  0x14   : > { %3570 = sst [smem:[#allocation18_spill]] %s2757_s18  ;;  %s1943_s24 = sadd.s32 4294967294, %s2773_s22  }
  0x15   : > { %3571 = sst [smem:[#allocation19_spill]] %s2761_s19  ;;  %s37_s25 = sadd.s32 1, %s2765_s20 }
  0x16   : > { %s40_s26 = sadd.s32 1, %s2769_s21  ;;  %p38_p0 = scmp.ge.s32.totalorder %s37_s25, 2 }
  0x17   : > { %s49_s27 = sadd.s32 1, %s2753_s17  ;;  %p56_p1 = scmp.ne.s32.totalorder %s2753_s17, %s2749_s16 }
  0x18   : > { %p57_p2 = scmp.eq.s32.totalorder %s2773_s22, 0  ;;  %s3628_s25 = smov (%p38_p0, %s37_s25), 0 }
  0x19   : > { %3572 = sst [smem:[#allocation20_spill]] %s3628_s25  ;;  %s3630_s26 = smov (!%p38_p0, %s40_s26), %s2769_s21 }
  0x1a   : > { %s45_s28 = ssub.s32 %s2765_s20, %s3628_s25  ;;  %p2907_p3 = por %p57_p2, %p56_p1 }
  0x1b   : > { %p42_p4 = scmp.ge.s32.totalorder %s3630_s26, 2  ;;  %s127_s30 = sadd.s32 1, %s2745_s15 }
  0x1c   : > { %s3573_s29 = scalar_select %p2907_p3, 1, 0 }
  0x1d   : > { %p134_p5 = scmp.ne.s32.totalorder %s2745_s15, %s2741_s14  ;;  %p140_p6 = scmp.ne.s32.totalorder %s2741_s14, %s2737_s13 }
  0x1e   : > { %s3632_s26 = smov (%p42_p4, %s3630_s26), 0  ;;  %p2925_p8 = scmp.eq.s32.totalorder %s1942_s23, 0 }
  0x1f   : > { %3574 = sst [smem:[#allocation21_spill]] %s3632_s26  ;;  %p2921_p7 = por %p134_p5, %p57_p2 }
  0x20   : > { %s3576_s12 = scalar_select %p2925_p8, 1, 0 }
  0x21   : > { %s3575_s11 = scalar_select %p2921_p7, 1, 0 }
  0x22   : > { %3577 = sst [smem:[#allocation22_spill]] %s3576_s12  ;;  %s44_s25 = ssub.s32 %s2769_s21, %s3632_s26 }
  0x23   : > { %p295_p9 = scmp.eq.s32.totalorder %s1942_s23, 3  ;;  %s46_s10 = sor.u32 %s45_s28, %s44_s25 }
  0x24   : > { %p125_p10 = scmp.eq.s32.totalorder %s44_s25, 0  ;;  %p47_p11 = scmp.eq.s32.totalorder %s46_s10, 0 }
  0x25   : > { %p2936_p12 = por %p2925_p8, %p140_p6  ;;  %p2949_p13 = por %p295_p9, %p134_p5 }
  0x26   : > { %s2941_s5 = scalar_select %p125_p10, %s2745_s15, %s127_s30  }
  0x27   : > { %s3578_s8 = scalar_select %p2936_p12, 1, 0 }
  0x28   : > { %3580 = sst [smem:[#allocation24_spill]] %s2941_s5  ;;  %p301_p0 = scmp.eq.s32.totalorder %s1943_s24, 3 }
  0x29   : > { %3579 = sst [smem:[#allocation23_spill]] %s3578_s8  ;;  %p1944_p1 = scmp.ge.s32.totalorder %s2773_s22, 1 }
  0x2a   : > { %s2944_s4 = scalar_select %p47_p11, %s2753_s17, %s49_s27  }
  0x2b   : > { %s3582_s2 = scalar_select %p2949_p13, 1, 0 }
  0x2c   : > { %3581 = sst [smem:[#allocation25_spill]] %s2944_s4  ;;  %p308_p2 = scmp.lt.s32.totalorder %s2773_s22, 5 }
  0x2d   : > { %3583 = sst [smem:[#allocation26_spill]] %s3582_s2  ;;  %p2958_p4 = por %p301_p0, %p140_p6 }
  0x2e   : > { %p2962_p7 = pnand %p1944_p1, %p308_p2  ;;  %s2775_s25 = smov [#allocation7]  }
  0x2f   : > { %s3584_s10 = scalar_select %p2958_p4, 1, 0 }
  0x30   : > { %s3586_s23 = scalar_select %p2962_p7, 1, 0 }
  0x31   : > { %3585 = sst [smem:[#allocation27_spill]] %s3584_s10  ;;  %s323_s27 = sshll.u32 %s2775_s25, 4  ;;  %s2968_s27 = int_to_ptr.vmem [resolvable:$true] %s323_s27 }
  0x32   : > { %p2414_p5 = pneg %p2962_p7  ;;  %s2776_s28 = smov [#allocation9]  }
  0x33   : > { %s336_s30 = sshll.u32 %s2776_s28, 4  ;;  %s2777_s26 = smov [#allocation10]   ;;  %s2976_s30 = int_to_ptr.vmem [resolvable:$true] %s336_s30 }
  0x34   : > { %p2972_p9 = pnand %p2414_p5, %p2925_p8  ;;  %s2978_s4 = sshll.u32 %s2777_s26, 4  ;;  %s353_s4 = int_to_ptr.vmem [resolvable:$true] %s2978_s4 }
  0x35   : > { %s2539_s25 = scalar_lea.hbm %s3538_s6, 2048 }
  0x36   : > { %p2540_p6 = scmp.ne.s32.totalorder %s3538_s6, %s2539_s25  ;;  %p2988_p10 = pneg %p2972_p9 }
  0x37   : > { %p2546_p1 = scmp.lt.u32.totalorder %s2539_s25, %s3538_s6 }
  0x38   : > { %p2542_p11 = pnand %p2988_p10, %p2540_p6 }
  0x3a   : > { %p2543_p0 = pneg %p2542_p11 }
  0x3c   : > { %p2548_p2 = pnand %p2546_p1, %p2543_p0 }
  0x3e   : > { %2551 = shalt.err (!%p2548_p2)
}
  0x3f   : > { %s2552_s2 = scalar_lea.vmem %s2968_s27, 2048  ;;  %p2560_p8 = scmp.lt.s32.totalorder %s2968_s27, %s2968_s27 }
  0x40   : > { %p2553_p5 = scmp.ne.s32.totalorder %s2968_s27, %s2552_s2  ;;  %p2561_p12 = scmp.lt.s32.totalorder %s2552_s2, %s2552_s2 }
  0x42   : > { %p2555_p4 = pnand %p2553_p5, %p2988_p10  ;;  %p2562_p6 = por %p2561_p12, %p2560_p8 }
  0x44   : > { %p2556_p13 = pneg %p2555_p4 }
  0x46   : > { %p2563_p11 = pnand %p2562_p6, %p2556_p13 }
  0x48   : > { %2566 = shalt.err (!%p2563_p11)
}
  0x49   : > { %s2778_s5 = smov 128   ;;  %s2779_s13 = smov 8  }
  0x4a   : > { %2417 = dma.hbm_to_vmem [thread:$0]  (!%p2972_p9), %s3538_s6, 2048, %s2968_s27, [#allocation8], %s2778_s5, %s2778_s5, %s2779_s13  }
  0x4b   : > { %s2567_s2 = scalar_lea.hbm %s3539_s7, 2048 }
  0x4c   : > { %p2568_p8 = scmp.ne.s32.totalorder %s3539_s7, %s2567_s2  ;;  %p2574_p4 = scmp.lt.u32.totalorder %s2567_s2, %s3539_s7 }
  0x4e   : > { %p2570_p12 = pnand %p2568_p8, %p2988_p10 }
  0x50   : > { %p2571_p13 = pneg %p2570_p12 }
  0x52   : > { %p2576_p0 = pnand %p2574_p4, %p2571_p13 }
  0x54   : > { %2579 = shalt.err (!%p2576_p0)
}
  0x55   : > { %s2580_s27 = scalar_lea.vmem %s2976_s30, 2048  ;;  %p2588_p6 = scmp.lt.s32.totalorder %s2976_s30, %s2976_s30 }
  0x56   : > { %p2581_p1 = scmp.ne.s32.totalorder %s2976_s30, %s2580_s27  ;;  %p2589_p11 = scmp.lt.s32.totalorder %s2580_s27, %s2580_s27 }
  0x58   : > { %p2583_p2 = pnand %p2581_p1, %p2988_p10  ;;  %p2590_p8 = por %p2589_p11, %p2588_p6 }
  0x5a   : > { %p2584_p5 = pneg %p2583_p2 }
  0x5c   : > { %p2591_p12 = pnand %p2590_p8, %p2584_p5 }
  0x5e   : > { %2594 = shalt.err (!%p2591_p12)
}
  0x5f   : > { %2420 = dma.hbm_to_vmem [thread:$0]  (!%p2972_p9), %s3539_s7, 2048, %s2976_s30, [#allocation8], %s2778_s5, %s2778_s5, %s2779_s13  }
  0x60   : > { %s2595_s10 = scalar_lea.hbm %s3541_s9, 2048 }
  0x61   : > { %p2596_p13 = scmp.ne.s32.totalorder %s3541_s9, %s2595_s10  ;;  %p2602_p1 = scmp.lt.u32.totalorder %s2595_s10, %s3541_s9 }
  0x63   : > { %p2598_p4 = pnand %p2596_p13, %p2988_p10 }
  0x65   : > { %p2599_p0 = pneg %p2598_p4 }
  0x67   : > { %p2604_p2 = pnand %p2602_p1, %p2599_p0 }
  0x69   : > { %2607 = shalt.err (!%p2604_p2)
}
  0x6a   : > { %s2608_s27 = scalar_lea.vmem %s353_s4, 2048  ;;  %p2616_p8 = scmp.lt.s32.totalorder %s353_s4, %s353_s4 }
  0x6b   : > { %p2609_p5 = scmp.ne.s32.totalorder %s353_s4, %s2608_s27  ;;  %p2617_p12 = scmp.lt.s32.totalorder %s2608_s27, %s2608_s27 }
  0x6d   : > { %p2611_p6 = pnand %p2609_p5, %p2988_p10  ;;  %p2618_p7 = por %p2617_p12, %p2616_p8 }
  0x6f   : > { %p2612_p11 = pneg %p2611_p6 }
  0x71   : > { %p2619_p3 = pnand %p2618_p7, %p2612_p11 }
  0x73   : > { %2622 = shalt.err (!%p2619_p3)
}
  0x74   : > { %2423 = dma.hbm_to_vmem [thread:$0]  (!%p2972_p9), %s3541_s9, 2048, %s353_s4, [#allocation11], %s2778_s5, %s2778_s5, %s2779_s13  }
  0x75   : > { %p1948_p13 = scmp.ge.s32.totalorder %s2773_s22, 4 }
  0x76   : > { %p3589_p10 = scmp.ne.s32.totalorder (!%p1948_p13), %s3573_s29, 0 }
  0x77   : > { %362 = sbr.rel (%p1948_p13) target bundleno = 176 (0xb0), region = 36 }
  0x7e   : > { %365 = sbr.rel (!%p3589_p10) target bundleno = 146 (0x92), region = 40  ;;  %s367_s1 = sand.u32 (%p3589_p10), 1, %s2753_s17  }
  0x7f   : > { %s1987_s18 = sshll.u32 (%p3589_p10), %s2769_s21, 5  ;;  %s1949_s19 = sshll.u32 (%p3589_p10), %s367_s1, 6 }
  0x80   : > { %s372_s24 = sadd.s32 (%p3589_p10), %s2765_s20, %s1987_s18  ;;  %s3590_s0 = sld [smem:[#allocation28_spill]] (%p3589_p10) }
  0x81   : > { %s1952_s12 = sshll.u32 (%p3589_p10), %s372_s24, 2  ;;  %s369_s4 = scalar_lea.vmem (%p3589_p10), [#allocation3], %s1949_s19 }
  0x86   : > { %s3069_s28 = scalar_lea.vmem %s3590_s0, %s1952_s12 }
  0x87   : > { %v390_v0 = vld [vmem:[%s3069_s28] sm:$0xf]  ;;  %v392_v1 = vld [vmem:[%s3069_s28 + $0x8] sm:$0xf]  ;;  %v394_v2 = vld [vmem:[%s3069_s28 + $0x10] sm:$0xf] }
  0x88   : > { %391 = vst [vmem:[%s369_s4] sm:$0xf] %v390_v0  ;;  %393 = vst [vmem:[%s369_s4 + $0x4] sm:$0xf] %v392_v1  ;;  %v396_v3 = vld [vmem:[%s3069_s28 + $0x18] sm:$0xf] }
  0x89   : > { %395 = vst [vmem:[%s369_s4 + $0x8] sm:$0xf] %v394_v2  ;;  %v398_v4 = vld [vmem:[%s3069_s28 + $0x20] sm:$0xf]  ;;  %v400_v5 = vld [vmem:[%s3069_s28 + $0x28] sm:$0xf] }
  0x8a   : > { %397 = vst [vmem:[%s369_s4 + $0xc] sm:$0xf] %v396_v3  ;;  %399 = vst [vmem:[%s369_s4 + $0x10] sm:$0xf] %v398_v4  ;;  %v402_v6 = vld [vmem:[%s3069_s28 + $0x30] sm:$0xf] }
  0x8b   : > { %401 = vst [vmem:[%s369_s4 + $0x14] sm:$0xf] %v400_v5  ;;  %v404_v7 = vld [vmem:[%s3069_s28 + $0x38] sm:$0xf]  ;;  %v406_v8 = vld [vmem:[%s3069_s28 + $0x40] sm:$0xf] }
  0x8c   : > { %403 = vst [vmem:[%s369_s4 + $0x18] sm:$0xf] %v402_v6  ;;  %405 = vst [vmem:[%s369_s4 + $0x1c] sm:$0xf] %v404_v7  ;;  %v408_v9 = vld [vmem:[%s3069_s28 + $0x48] sm:$0xf] }
  0x8d   : > { %407 = vst [vmem:[%s369_s4 + $0x20] sm:$0xf] %v406_v8  ;;  %v410_v10 = vld [vmem:[%s3069_s28 + $0x50] sm:$0xf]  ;;  %v412_v11 = vld [vmem:[%s3069_s28 + $0x58] sm:$0xf] }
  0x8e   : > { %409 = vst [vmem:[%s369_s4 + $0x24] sm:$0xf] %v408_v9  ;;  %411 = vst [vmem:[%s369_s4 + $0x28] sm:$0xf] %v410_v10  ;;  %v414_v12 = vld [vmem:[%s3069_s28 + $0x60] sm:$0xf] }
  0x8f   : > { %413 = vst [vmem:[%s369_s4 + $0x2c] sm:$0xf] %v412_v11  ;;  %v416_v13 = vld [vmem:[%s3069_s28 + $0x68] sm:$0xf]  ;;  %v418_v14 = vld [vmem:[%s3069_s28 + $0x70] sm:$0xf] }
  0x90   : > { %415 = vst [vmem:[%s369_s4 + $0x30] sm:$0xf] %v414_v12  ;;  %417 = vst [vmem:[%s369_s4 + $0x34] sm:$0xf] %v416_v13  ;;  %v420_v15 = vld [vmem:[%s3069_s28 + $0x78] sm:$0xf] }
  0x91   : > { %419 = vst [vmem:[%s369_s4 + $0x38] sm:$0xf] %v418_v14  ;;  %421 = vst [vmem:[%s369_s4 + $0x3c] sm:$0xf] %v420_v15 }
  0x92 PF: > { %s495_s29 = sand.u32 1, %s2745_s15   ;;  %s1988_s5 = sshll.u32 %s2769_s21, 11 }
  0x93   : > { %s1953_s13 = sshll.u32 %s495_s29, 7  ;;  %s3591_s3 = sld [smem:[#allocation31_spill]] }
  0x94   : > { %s499_s30 = scalar_lea.vmem [#allocation4], %s1953_s13  ;;  %s3096_s1 = scalar_lea.sflag [#allocation5], %s495_s29 }
  0x95   : > { %s506_s8 = sshll.u32 %s499_s30, 4  ;;  %p3592_p7 = scmp.ne.s32.totalorder %s3575_s11, 0  ;;  %s3094_s8 = int_to_ptr.vmem [resolvable:$true] %s506_s8 }
  0x99   : > { %s3092_s27 = scalar_lea.hbm %s3591_s3, %s1988_s5  ;;  %s2627_s12 = scalar_lea.hbm %s3591_s3, 4096 }
  0x9a   : > { %s2623_s18 = scalar_lea.hbm %s3092_s27, 2048  ;;  %p2628_p0 = scmp.lt.u32.totalorder %s3092_s27, %s3591_s3 }
  0x9b   : > { %p2624_p3 = scmp.ne.s32.totalorder %s3092_s27, %s2623_s18  ;;  %p2629_p1 = scmp.lt.u32.totalorder %s2627_s12, %s2623_s18 }
  0x9c   : > { %p2631_p5 = scmp.lt.u32.totalorder %s2623_s18, %s3092_s27 }
  0x9d   : > { %p2625_p9 = pnand %p2624_p3, %p3592_p7  ;;  %p2630_p2 = por %p2629_p1, %p2628_p0 }
  0x9f   : > { %p2626_p4 = pneg %p2625_p9  ;;  %p2632_p6 = por %p2631_p5, %p2630_p2 }
  0xa1   : > { %p2633_p11 = pnand %p2632_p6, %p2626_p4 }
  0xa3   : > { %2636 = shalt.err (!%p2633_p11)
}
  0xa4   : > { %s2637_s28 = scalar_lea.vmem %s3094_s8, 2048  ;;  %s2780_s4 = smov [#allocation4]  }
  0xa5   : > { %p2638_p8 = scmp.ne.s32.totalorder %s3094_s8, %s2637_s28  ;;  %s2641_s29 = sshll.u32 %s2780_s4, 4  ;;  %s2642_s29 = int_to_ptr.vmem [resolvable:$false] %s2641_s29 }
  0xa6   : > { %s2643_s5 = scalar_lea.vmem %s2642_s29, 4096  ;;  %p2644_p10 = scmp.lt.s32.totalorder %s3094_s8, %s2642_s29 }
  0xa7   : > { %p2639_p12 = pnand %p2638_p8, %p3592_p7  ;;  %p2645_p3 = scmp.lt.s32.totalorder %s2643_s5, %s2637_s28 }
  0xa9   : > { %p2640_p13 = pneg %p2639_p12  ;;  %p2646_p9 = por %p2645_p3, %p2644_p10 }
  0xab   : > { %p2647_p0 = pnand %p2646_p9, %p2640_p13 }
  0xad   : > { %2650 = shalt.err (!%p2647_p0)
}
  0xae   : > { %s2781_s13 = smov 128   ;;  %s2782_s26 = smov 8  }
  0xaf   : > { %2404 = dma.hbm_to_vmem [thread:$0]  (%p3592_p7), %s3092_s27, 2048, %s3094_s8, %s3096_s1, %s2781_s13, %s2781_s13, %s2782_s26  }
  0xb0 PF: > { %p3593_p4 = scmp.ne.s32.totalorder %s3586_s23, 0 }
  0xb1   : > { %s3594_s2 = sld [smem:[#allocation23_spill]] (!%p3593_p4)  ;;  %s530_s30 = sand.u32 (!%p3593_p4), 1, %s2749_s16  }
  0xb2   : > { %527 = sbr.rel (%p3593_p4) target bundleno = 1431 (0x597), region = 97  ;;  %s3124_s18 = sand.u32 (!%p3593_p4), 1, %s2741_s14  }
  0xb3   : > { %s1957_s19 = sshll.u32 (!%p3593_p4), %s530_s30, 6  ;;  %s1958_s24 = sshll.u32 (!%p3593_p4), %s3124_s18, 7 }
  0xb4   : > { %s3127_s12 = scalar_lea.vmem (!%p3593_p4), [#allocation3], %s1957_s19  ;;  %s537_s10 = scalar_lea.sflag (!%p3593_p4), [#allocation5], %s3124_s18 }
  0xb5   : > { %s3130_s25 = scalar_lea.vmem (!%p3593_p4), [#allocation4], %s1958_s24 }
  0xb7   : > { %p3595_p7 = scmp.ne.s32.totalorder (!%p3593_p4), %s3594_s2, 0 }
  0xb9   : > { %2720 = dma.done.wait (%p3595_p7), %s537_s10, 2048  }
  0xba   : > { %2722 = vsyncadd (%p3595_p7), %s537_s10, 4294965248  ;;  %s3596_s11 = sld [smem:[#allocation22_spill]] }
  0xc0   : > { %p3597_p1 = scmp.ne.s32.totalorder %s3596_s11, 0 }
  0xc2   : > { %2724 = dma.done.wait (%p3597_p1), [#allocation8], 4096  }
  0xc3   : > { %2726 = vsyncadd (%p3597_p1), [#allocation8], 4294963200 }
  0xc4   : > { %2728 = dma.done.wait (%p3597_p1), [#allocation11], 2048  }
  0xc5   : > { %2730 = vsyncadd (%p3597_p1), [#allocation11], 4294965248  ;;  %s3598_s16 = sld [smem:[#allocation18_spill]]  ;;  %s3599_s23 = sld [smem:[#allocation19_spill]] }
  0xc6   : > { %s3600_s29 = sld [smem:[#allocation29_spill]]  ;;  %s3601_s2 = sld [smem:[#allocation30_spill]] }
  0xc7   : > { %s3602_s0 = sld [smem:[#allocation32_spill]] }
  0xcb   : > { %s1963_s27 = sshll.u32 %s3598_s16, 4  ;;  %s1967_s8 = sshll.u32 %s3599_s23, 4 }
  0xcc   : > { %p610_p2 = scmp.lt.s32.totalorder %s1963_s27, 31  ;;  %p623_p5 = scmp.lt.s32.totalorder %s1967_s8, 31 }
  0xcd   : > { %s3161_s23 = scalar_lea.vmem [#allocation12], %s1958_s24  ;;  %p1969_p6 = scmp.ne.s32.totalorder %s3598_s16, 0 }
  0xce   : > { %s3634_s27 = smov (!%p610_p2, %s1963_s27), 31  ;;  %s3636_s8 = smov (!%p623_p5, %s1967_s8), 31 }
  0xcf   : > { %s1964_s1 = sshll.u32 %s3634_s27, 3  ;;  %s1968_s19 = sshll.u32 %s3636_s8, 3  ;;  %v2783_v16 = vmov (!%p1969_p6), 0.0  }
  0xd0   : > { %s3149_s5 = scalar_lea.vmem %s3600_s29, %s1964_s1  ;;  %s3154_s30 = scalar_lea.vmem %s3601_s2, %s1964_s1  ;;  %634 = vst [vmem:[#allocation2] sm:$0xff] (!%p1969_p6), %v2783_v16  ;;  %635 = vst [vmem:[#allocation2 + $0x8] sm:$0xff] (!%p1969_p6), %v2783_v16 }
  0xd1   : > { %s3159_s3 = scalar_lea.vmem %s3602_s0, %s1968_s19  ;;  %633 = sbr.rel (%p1969_p6) target bundleno = 216 (0xd8), region = 121  ;;  %636 = vst [vmem:[#allocation2 + $0x10] sm:$0xff] (!%p1969_p6), %v2783_v16  ;;  %637 = vst [vmem:[#allocation2 + $0x18] sm:$0xff] (!%p1969_p6), %v2783_v16 }
  0xd2   : > { %638 = vst [vmem:[#allocation2 + $0x20] sm:$0xff] (!%p1969_p6), %v2783_v16  ;;  %639 = vst [vmem:[#allocation2 + $0x28] sm:$0xff] (!%p1969_p6), %v2783_v16 }
  0xd3   : > { %640 = vst [vmem:[#allocation2 + $0x30] sm:$0xff] (!%p1969_p6), %v2783_v16  ;;  %641 = vst [vmem:[#allocation2 + $0x38] sm:$0xff] (!%p1969_p6), %v2783_v16 }
  0xd4   : > { %642 = vst [vmem:[#allocation2 + $0x40] sm:$0xff] (!%p1969_p6), %v2783_v16  ;;  %643 = vst [vmem:[#allocation2 + $0x48] sm:$0xff] (!%p1969_p6), %v2783_v16 }
  0xd5   : > { %644 = vst [vmem:[#allocation2 + $0x50] sm:$0xff] (!%p1969_p6), %v2783_v16  ;;  %645 = vst [vmem:[#allocation2 + $0x58] sm:$0xff] (!%p1969_p6), %v2783_v16 }
  0xd6   : > { %646 = vst [vmem:[#allocation2 + $0x60] sm:$0xff] (!%p1969_p6), %v2783_v16  ;;  %647 = vst [vmem:[#allocation2 + $0x68] sm:$0xff] (!%p1969_p6), %v2783_v16 }
  0xd7   : > { %648 = vst [vmem:[#allocation2 + $0x70] sm:$0xff] (!%p1969_p6), %v2783_v16  ;;  %649 = vst [vmem:[#allocation2 + $0x78] sm:$0xff] (!%p1969_p6), %v2783_v16 }
  0xd8 PF: > { %v652_v17 = vld [vmem:[%s3154_s30 + $0x10] sm:$0xff]  ;;  %v650_v18 = vld [vmem:[%s3154_s30] sm:$0xff]  ;;  %v653_v19 = vld [vmem:[%s3154_s30 + $0x18] sm:$0xff]  ;;  %v2784_v20 = vmov 0   ;;  %s3603_s16 = sld [smem:[#allocation33_spill]] }
  0xd9   : > { %2528 = vset.pattern.permute.xlu1 %v2784_v20  ;;  %2527 = vset.pattern.permute.xlu0 %v2784_v20  ;;  %vm668_vm0 = vcmp.gt.f32.partialorder %v652_v17, 0.0  ;;  %vm666_vm1 = vcmp.gt.f32.partialorder %v650_v18, 0.0  ;;  %vm669_vm2 = vcmp.gt.f32.partialorder %v653_v19, 0.0  ;;  %v651_v21 = vld [vmem:[%s3154_s30 + $0x8] sm:$0xff]  ;;  %v654_v25 = vld [vmem:[%s3154_s30 + $0x20] sm:$0xff]  ;;  %v657_v28 = vld [vmem:[%s3154_s30 + $0x38] sm:$0xff] }
  0xda   : > { %v701_v22 = vsel %vm668_vm0, 1, %v2784_v20  ;;  %v699_v23 = vsel %vm666_vm1, 1, %v2784_v20  ;;  %vm667_vm3 = vcmp.gt.f32.partialorder %v651_v21, 0.0  ;;  %v655_v24 = vld [vmem:[%s3154_s30 + $0x28] sm:$0xff]  ;;  %v702_v26 = vsel %vm669_vm2, 1, %v2784_v20  ;;  %v656_v29 = vld [vmem:[%s3154_s30 + $0x30] sm:$0xff] }
  0xdb   : > { %722 = vperm.xlu1 %2528, %v701_v22   ;;  %716 = vperm.xlu0 %2527, %v699_v23   ;;  %v700_v27 = vsel %vm667_vm3, 1, %v2784_v20  ;;  %vm671_vm4 = vcmp.gt.f32.partialorder %v655_v24, 0.0  ;;  %vm670_vm5 = vcmp.gt.f32.partialorder %v654_v25, 0.0  ;;  %vm673_vm6 = vcmp.gt.f32.partialorder %v657_v28, 0.0  ;;  %v801_v30 = vld [vmem:[#allocation7] sm:$0xff]  ;;  %v802_v31 = vld [vmem:[#allocation7 + $0x8] sm:$0xff] }
  0xdc   : > { %v704_v32 = vsel %vm671_vm4, 1, %v2784_v20  ;;  %v703_v33 = vsel %vm670_vm5, 1, %v2784_v20  ;;  %vm672_vm7 = vcmp.gt.f32.partialorder %v656_v29, 0.0  ;;  %v659_v34 = vld [vmem:[%s3154_s30 + $0x48] sm:$0xff]  ;;  %v803_v35 = vld [vmem:[#allocation7 + $0x10] sm:$0xff]  ;;  %v804_v36 = vld [vmem:[#allocation7 + $0x18] sm:$0xff]  ;;  %v2302_v40 = vpack.c.bf16 %v802_v31, %v801_v30 }
  0xdd   : > { %v658_v37 = vld [vmem:[%s3154_s30 + $0x40] sm:$0xff]  ;;  %v661_v38 = vld [vmem:[%s3154_s30 + $0x58] sm:$0xff]  ;;  %v660_v39 = vld [vmem:[%s3154_s30 + $0x50] sm:$0xff]  ;;  %v2306_v41 = vpack.c.bf16 %v804_v36, %v803_v35  ;;  %v706_v42 = vsel %vm673_vm6, 1, %v2784_v20  ;;  %v705_v43 = vsel %vm672_vm7, 1, %v2784_v20  ;;  %vm675_vm8 = vcmp.gt.f32.partialorder %v659_v34, 0.0 }
  0xde   : > { %v805_v44 = vld [vmem:[#allocation7 + $0x20] sm:$0xff]  ;;  %v806_v45 = vld [vmem:[#allocation7 + $0x28] sm:$0xff]  ;;  %vm674_vm9 = vcmp.gt.f32.partialorder %v658_v37, 0.0  ;;  %vm677_vm10 = vcmp.gt.f32.partialorder %v661_v38, 0.0  ;;  %vm676_vm11 = vcmp.gt.f32.partialorder %v660_v39, 0.0  ;;  %2303 = vmatprep.subr.bf16.mxu0 %v2302_v40  ;;  %v708_v49 = vsel %vm675_vm8, 1, %v2784_v20 }
  0xdf   : > { %725 = vperm.xlu1 %2528, %v702_v26   ;;  %719 = vperm.xlu0 %2527, %v700_v27   ;;  %v663_v46 = vld [vmem:[%s3154_s30 + $0x68] sm:$0xff]  ;;  %v662_v47 = vld [vmem:[%s3154_s30 + $0x60] sm:$0xff]  ;;  %v2310_v48 = vpack.c.bf16 %v806_v45, %v805_v44  ;;  %v707_v50 = vsel %vm674_vm9, 1, %v2784_v20  ;;  %v710_v51 = vsel %vm677_vm10, 1, %v2784_v20  ;;  %v709_v52 = vsel %vm676_vm11, 1, %v2784_v20  ;;  %v807_v53 = vld [vmem:[#allocation7 + $0x30] sm:$0xff] }
  0xe0   : > { %2305 = vmatpush3.bf16.msra.mxu0 %v2302_v40  ;;  %v808_v54 = vld [vmem:[#allocation7 + $0x38] sm:$0xff]  ;;  %vm679_vm12 = vcmp.gt.f32.partialorder %v663_v46, 0.0  ;;  %vm678_vm13 = vcmp.gt.f32.partialorder %v662_v47, 0.0  ;;  %v809_v56 = vld [vmem:[#allocation7 + $0x40] sm:$0xff]  ;;  %v810_v57 = vld [vmem:[#allocation7 + $0x48] sm:$0xff] }
  0xe1   : > { %2307 = vmatprep.subr.bf16.mxu0 %v2306_v41  ;;  %v2314_v55 = vpack.c.bf16 %v808_v54, %v807_v53  ;;  %v665_v58 = vld [vmem:[%s3154_s30 + $0x78] sm:$0xff]  ;;  %v664_v59 = vld [vmem:[%s3154_s30 + $0x70] sm:$0xff]  ;;  %v2318_v60 = vpack.c.bf16 %v810_v57, %v809_v56  ;;  %v712_v63 = vsel %vm679_vm12, 1, %v2784_v20  ;;  %v711_v0 = vsel %vm678_vm13, 1, %v2784_v20  ;;  %v813_v2 = vld [vmem:[#allocation7 + $0x60] sm:$0xff] }
  0xe2   : > { %v811_v61 = vld [vmem:[#allocation7 + $0x50] sm:$0xff]  ;;  %v812_v62 = vld [vmem:[#allocation7 + $0x58] sm:$0xff]  ;;  %vm681_vm14 = vcmp.gt.f32.partialorder %v665_v58, 0.0  ;;  %vm680_vm15 = vcmp.gt.f32.partialorder %v664_v59, 0.0  ;;  %v814_v3 = vld [vmem:[#allocation7 + $0x68] sm:$0xff] }
  0xe3   : > { %731 = vperm.xlu1 %2528, %v704_v32   ;;  %728 = vperm.xlu0 %2527, %v703_v33   ;;  %v2322_v1 = vpack.c.bf16 %v812_v62, %v811_v61  ;;  %v714_v4 = vsel %vm681_vm14, 1, %v2784_v20  ;;  %v713_v5 = vsel %vm680_vm15, 1, %v2784_v20  ;;  %v2326_v6 = vpack.c.bf16 %v814_v3, %v813_v2  ;;  %v815_v7 = vld [vmem:[#allocation7 + $0x70] sm:$0xff]  ;;  %v816_v8 = vld [vmem:[#allocation7 + $0x78] sm:$0xff]  ;;  %v3202_v10 = vld [vmem:[%s3603_s16] ss:$0 sm:$0xff] }
  0xe4   : > { %2309 = vmatpush3.bf16.msra.mxu0 %v2306_v41  ;;  %v2330_v9 = vpack.c.bf16 %v816_v8, %v815_v7  ;;  %v683_v11 = vld [vmem:[%s3149_s5] sm:$0xff]  ;;  %v685_v15 = vld [vmem:[%s3149_s5 + $0x10] sm:$0xff]  ;;  %v684_v16 = vld [vmem:[%s3149_s5 + $0x8] sm:$0xff] }
  0xe5   : > { %2311 = vmatprep.subr.bf16.mxu0 %v2310_v48  ;;  %v686_v21 = vld [vmem:[%s3149_s5 + $0x18] sm:$0xff]  ;;  %v687_v22 = vld [vmem:[%s3149_s5 + $0x20] sm:$0xff]  ;;  %v688_v27 = vld [vmem:[%s3149_s5 + $0x28] sm:$0xff] }
  0xe6   : > { %v689_v28 = vld [vmem:[%s3149_s5 + $0x30] sm:$0xff]  ;;  %v690_v33 = vld [vmem:[%s3149_s5 + $0x38] sm:$0xff]  ;;  %v691_v34 = vld [vmem:[%s3149_s5 + $0x40] sm:$0xff] }
  0xe7   : > { %737 = vperm.xlu1 %2528, %v706_v42   ;;  %734 = vperm.xlu0 %2527, %v705_v43   ;;  %v692_v39 = vld [vmem:[%s3149_s5 + $0x48] sm:$0xff]  ;;  %v693_v40 = vld [vmem:[%s3149_s5 + $0x50] sm:$0xff]  ;;  %v694_v45 = vld [vmem:[%s3149_s5 + $0x58] sm:$0xff] }
  0xe8   : > { %2313 = vmatpush3.bf16.msra.mxu0 %v2310_v48  ;;  %v695_v46 = vld [vmem:[%s3149_s5 + $0x60] sm:$0xff]  ;;  %v698_v57 = vld [vmem:[%s3149_s5 + $0x78] sm:$0xff] }
  0xe9   : > { %2315 = vmatprep.subr.bf16.mxu0 %v2314_v55  ;;  %v2529_v59 = vld [vmem:[%s3127_s12] sm:$0xff]  }
  0xea   : > { %2174 = vmatprep.mubr.bf16.mxu1 %v2529_v59 }
  0xeb   : > { %743 = vperm.xlu1 %2528, %v708_v49   ;;  %740 = vperm.xlu0 %2527, %v707_v50  }
  0xec   : > { %2317 = vmatpush3.bf16.msra.mxu0 %v2314_v55 }
  0xed   : > { %2319 = vmatprep.subr.bf16.mxu0 %v2318_v60 }
  0xef   : > { %749 = vperm.xlu1 %2528, %v710_v51   ;;  %746 = vperm.xlu0 %2527, %v709_v52   ;;  %v696_v51 = vld [vmem:[%s3149_s5 + $0x68] sm:$0xff]  ;;  %v697_v52 = vld [vmem:[%s3149_s5 + $0x70] sm:$0xff] }
  0xf0   : > { %2321 = vmatpush3.bf16.msra.mxu0 %v2318_v60 }
  0xf1   : > { %2323 = vmatprep.subr.bf16.mxu0 %v2322_v1 }
  0xf3   : > { %755 = vperm.xlu1 %2528, %v712_v63   ;;  %752 = vperm.xlu0 %2527, %v711_v0  }
  0xf4   : > { %2325 = vmatpush3.bf16.msra.mxu0 %v2322_v1 }
  0xf5   : > { %2327 = vmatprep.subr.bf16.mxu0 %v2326_v6 }
  0xf7   : > { %761 = vperm.xlu1 %2528, %v714_v4   ;;  %758 = vperm.xlu0 %2527, %v713_v5  }
  0xf8   : > { %2329 = vmatpush3.bf16.msra.mxu0 %v2326_v6 }
  0xf9   : > { %2331 = vmatprep.subr.bf16.mxu0 %v2330_v9 }
  0xfc   : > { %2333 = vmatpush3.bf16.msra.mxu0 %v2330_v9 }
 0x15a   : > { %v723_v12 = vpop.permute.xlu1 %722  ;;  %v717_v13 = vpop.permute.xlu0 %716 }
 0x15b   : > { %vm763_vm0 = vcmp.eq.s32.totalorder %v717_v13, 1  ;;  %vm765_vm1 = vcmp.eq.s32.totalorder %v723_v12, 1 }
 0x15c   : > { %v785_v14 = vsel %vm763_vm0, %v3202_v10, %v683_v11  ;;  %v787_v19 = vsel %vm765_vm1, %v3202_v10, %v685_v15 }
 0x15d   : > { %2134 = vmatprep.mubr.f32.mxu0 %v785_v14 }
 0x15e   : > { %v726_v17 = vpop.permute.xlu1 %725  ;;  %v720_v18 = vpop.permute.xlu0 %719 }
 0x15f   : > { %vm764_vm2 = vcmp.eq.s32.totalorder %v720_v18, 1  ;;  %vm766_vm3 = vcmp.eq.s32.totalorder %v726_v17, 1 }
 0x160   : > { %v786_v20 = vsel %vm764_vm2, %v3202_v10, %v684_v16  ;;  %v788_v25 = vsel %vm766_vm3, %v3202_v10, %v686_v21  ;;  %v2531_v21 = vld [vmem:[%s3127_s12 + $0x10] sm:$0xff]  }
 0x161   : > { %2135 = vmatmul.mubr.f32.vlgmr.msra.gmra.mrb[0].mxu0 %v786_v20  ;;  %v2530_v20 = vld [vmem:[%s3127_s12 + $0x8] sm:$0xff]  }
 0x162   : > { %v732_v23 = vpop.permute.xlu1 %731  ;;  %2137 = vmatprep.mubr.f32.mxu0 %v787_v19  ;;  %v729_v24 = vpop.permute.xlu0 %728 }
 0x163   : > { %vm767_vm4 = vcmp.eq.s32.totalorder %v729_v24, 1  ;;  %vm768_vm5 = vcmp.eq.s32.totalorder %v732_v23, 1  ;;  %v2533_v23 = vld [vmem:[%s3127_s12 + $0x20] sm:$0xff]   ;;  %v2534_v24 = vld [vmem:[%s3127_s12 + $0x28] sm:$0xff]  }
 0x164   : > { %v789_v26 = vsel %vm767_vm4, %v3202_v10, %v687_v22  ;;  %v790_v31 = vsel %vm768_vm5, %v3202_v10, %v688_v27  ;;  %v2532_v22 = vld [vmem:[%s3127_s12 + $0x18] sm:$0xff]   ;;  %v964_v27 = vld [vmem:[#allocation2 + $0x10] sm:$0xff] }
 0x165   : > { %2138 = vmatmul.mubr.f32.gmra.mrb[2].mxu0 %v788_v25  ;;  %v2535_v25 = vld [vmem:[%s3127_s12 + $0x30] sm:$0xff]  }
 0x166   : > { %v738_v29 = vpop.permute.xlu1 %737  ;;  %2140 = vmatprep.mubr.f32.mxu0 %v789_v26  ;;  %v735_v30 = vpop.permute.xlu0 %734  ;;  %v2536_v26 = vld [vmem:[%s3127_s12 + $0x38] sm:$0xff]   ;;  %s3604_s12 = sld [smem:[#allocation18_spill]] }
 0x167   : > { %vm769_vm6 = vcmp.eq.s32.totalorder %v735_v30, 1  ;;  %vm770_vm7 = vcmp.eq.s32.totalorder %v738_v29, 1  ;;  %v965_v30 = vld [vmem:[#allocation2 + $0x18] sm:$0xff] }
 0x168   : > { %v791_v32 = vsel %vm769_vm6, %v3202_v10, %v689_v28  ;;  %v792_v37 = vsel %vm770_vm7, %v3202_v10, %v690_v33  ;;  %v962_v28 = vld [vmem:[#allocation2] sm:$0xff]  ;;  %v963_v33 = vld [vmem:[#allocation2 + $0x8] sm:$0xff] }
 0x169   : > { %2141 = vmatmul.mubr.f32.gmra.mrb[4].mxu0 %v790_v31 }
 0x16a   : > { %v744_v35 = vpop.permute.xlu1 %743  ;;  %2143 = vmatprep.mubr.f32.mxu0 %v791_v32  ;;  %v741_v36 = vpop.permute.xlu0 %740 }
 0x16b   : > { %vm771_vm8 = vcmp.eq.s32.totalorder %v741_v36, 1  ;;  %vm772_vm9 = vcmp.eq.s32.totalorder %v744_v35, 1 }
 0x16c   : > { %v793_v38 = vsel %vm771_vm8, %v3202_v10, %v691_v34  ;;  %v794_v43 = vsel %vm772_vm9, %v3202_v10, %v692_v39  ;;  %v968_v39 = vld [vmem:[#allocation2 + $0x30] sm:$0xff]  ;;  %p1979_p11 = scmp.ne.s32.totalorder %s3604_s12, 1 }
 0x16d   : > { %2144 = vmatmul.mubr.f32.gmra.mrb[6].mxu0 %v792_v37  ;;  %s3605_s8 = sld [smem:[#allocation33_spill]] (!%p1979_p11)  ;;  %s3606_s28 = sld [smem:[#allocation34_spill]] (!%p1979_p11) }
 0x16e   : > { %v750_v41 = vpop.permute.xlu1 %749  ;;  %2146 = vmatprep.mubr.f32.mxu0 %v793_v38  ;;  %v747_v42 = vpop.permute.xlu0 %746 }
 0x16f   : > { %vm773_vm10 = vcmp.eq.s32.totalorder %v747_v42, 1  ;;  %vm774_vm11 = vcmp.eq.s32.totalorder %v750_v41, 1  ;;  %v969_v42 = vld [vmem:[#allocation2 + $0x38] sm:$0xff] }
 0x170   : > { %v795_v44 = vsel %vm773_vm10, %v3202_v10, %v693_v40  ;;  %v796_v49 = vsel %vm774_vm11, %v3202_v10, %v694_v45  ;;  %v966_v40 = vld [vmem:[#allocation2 + $0x20] sm:$0xff]  ;;  %v967_v45 = vld [vmem:[#allocation2 + $0x28] sm:$0xff] }
 0x171   : > { %2147 = vmatmul.mubr.f32.gmra.mrb[8].mxu0 %v794_v43 }
 0x172   : > { %v756_v47 = vpop.permute.xlu1 %755  ;;  %2149 = vmatprep.mubr.f32.mxu0 %v795_v44  ;;  %v753_v48 = vpop.permute.xlu0 %752 }
 0x173   : > { %vm775_vm12 = vcmp.eq.s32.totalorder %v753_v48, 1  ;;  %vm776_vm13 = vcmp.eq.s32.totalorder %v756_v47, 1 }
 0x174   : > { %v797_v50 = vsel %vm775_vm12, %v3202_v10, %v695_v46  ;;  %v798_v55 = vsel %vm776_vm13, %v3202_v10, %v696_v51  ;;  %v972_v51 = vld [vmem:[#allocation2 + $0x50] sm:$0xff] }
 0x175   : > { %2150 = vmatmul.mubr.f32.gmra.mrb[10].mxu0 %v796_v49 }
 0x176   : > { %v762_v53 = vpop.permute.xlu1 %761  ;;  %2152 = vmatprep.mubr.f32.mxu0 %v797_v50  ;;  %v759_v54 = vpop.permute.xlu0 %758 }
 0x177   : > { %vm777_vm14 = vcmp.eq.s32.totalorder %v759_v54, 1  ;;  %vm778_vm15 = vcmp.eq.s32.totalorder %v762_v53, 1  ;;  %v973_v54 = vld [vmem:[#allocation2 + $0x58] sm:$0xff] }
 0x178   : > { %v799_v56 = vsel %vm777_vm14, %v3202_v10, %v697_v52  ;;  %v800_v58 = vsel %vm778_vm15, %v3202_v10, %v698_v57  ;;  %v970_v52 = vld [vmem:[#allocation2 + $0x40] sm:$0xff]  ;;  %v971_v57 = vld [vmem:[#allocation2 + $0x48] sm:$0xff] }
 0x179   : > { %2153 = vmatmul.mubr.f32.gmra.mrb[12].mxu0 %v798_v55 }
 0x17a   : > { %2155 = vmatprep.mubr.f32.mxu0 %v799_v56 }
 0x17d   : > { %2156 = vmatmul.mubr.f32.gmra.mrb[14].mxu0 %v800_v58 }
 0x234   : > { %v2136_v60 = vpop.f32.mrb[0].mxu0 }
 0x235   : > { %v883_v61 = vpop.f32.mrb[1].mxu0 }
 0x236   : > { %v994_v62 = vpack.c.bf16 %v2136_v60, %v883_v61 }
 0x238   : > { %v2139_v63 = vpop.f32.mrb[2].mxu0  ;;  %2158 = vmatprep.subr.bf16.mxu1 %v994_v62 }
 0x239   : > { %v893_v0 = vpop.f32.mrb[3].mxu0  ;;  %2159 = vmatpush3.bf16.msra.mxu1 %v994_v62 }
 0x23a   : > { %v995_v1 = vpack.c.bf16 %v2139_v63, %v893_v0  ;;  %v976_v63 = vld [vmem:[#allocation2 + $0x70] sm:$0xff]  ;;  %v974_v0 = vld [vmem:[#allocation2 + $0x60] sm:$0xff] }
 0x23c   : > { %v2142_v2 = vpop.f32.mrb[4].mxu0  ;;  %2160 = vmatprep.subr.bf16.mxu1 %v995_v1 }
 0x23d   : > { %v903_v3 = vpop.f32.mrb[5].mxu0  ;;  %2161 = vmatpush3.bf16.msra.mxu1 %v995_v1 }
 0x23e   : > { %v996_v4 = vpack.c.bf16 %v2142_v2, %v903_v3  ;;  %v977_v2 = vld [vmem:[#allocation2 + $0x78] sm:$0xff] }
 0x240   : > { %v2145_v5 = vpop.f32.mrb[6].mxu0  ;;  %2162 = vmatprep.subr.bf16.mxu1 %v996_v4 }
 0x241   : > { %v913_v6 = vpop.f32.mrb[7].mxu0  ;;  %2163 = vmatpush3.bf16.msra.mxu1 %v996_v4 }
 0x242   : > { %v997_v7 = vpack.c.bf16 %v2145_v5, %v913_v6  ;;  %v975_v5 = vld [vmem:[#allocation2 + $0x68] sm:$0xff] }
 0x244   : > { %v2148_v8 = vpop.f32.mrb[8].mxu0  ;;  %2164 = vmatprep.subr.bf16.mxu1 %v997_v7 }
 0x245   : > { %v923_v9 = vpop.f32.mrb[9].mxu0  ;;  %2165 = vmatpush3.bf16.msra.mxu1 %v997_v7 }
 0x246   : > { %v998_v10 = vpack.c.bf16 %v2148_v8, %v923_v9 }
 0x248   : > { %v2151_v11 = vpop.f32.mrb[10].mxu0  ;;  %2166 = vmatprep.subr.bf16.mxu1 %v998_v10 }
 0x249   : > { %v933_v12 = vpop.f32.mrb[11].mxu0  ;;  %2167 = vmatpush3.bf16.msra.mxu1 %v998_v10 }
 0x24a   : > { %v999_v13 = vpack.c.bf16 %v2151_v11, %v933_v12  ;;  %v1185_v11 = vld [vmem:[%s3159_s3 + $0x10] sm:$0xff] (!%p1979_p11)  ;;  %v1183_v12 = vld [vmem:[%s3159_s3] sm:$0xff] (!%p1979_p11) }
 0x24b   : > { %vm1201_vm0 = vcmp.gt.f32.partialorder (!%p1979_p11), %v1185_v11, 0.0  ;;  %vm1199_vm1 = vcmp.gt.f32.partialorder (!%p1979_p11), %v1183_v12, 0.0  ;;  %v1571_v11 = vld [vmem:[#allocation10 + $0x28] sm:$0xff] (!%p1979_p11) }
 0x24c   : > { %v2154_v14 = vpop.f32.mrb[12].mxu0  ;;  %2168 = vmatprep.subr.bf16.mxu1 %v999_v13 }
 0x24d   : > { %v943_v15 = vpop.f32.mrb[13].mxu0  ;;  %2169 = vmatpush3.bf16.msra.mxu1 %v999_v13  ;;  %v1186_v13 = vld [vmem:[%s3159_s3 + $0x18] sm:$0xff] (!%p1979_p11) }
 0x24e   : > { %v1000_v16 = vpack.c.bf16 %v2154_v14, %v943_v15  ;;  %v2785_v14 = vmov (!%p1979_p11), 0   ;;  %vm1202_vm2 = vcmp.gt.f32.partialorder (!%p1979_p11), %v1186_v13, 0.0  ;;  %v1184_v15 = vld [vmem:[%s3159_s3 + $0x8] sm:$0xff] (!%p1979_p11)  ;;  %v1572_v13 = vld [vmem:[#allocation10 + $0x30] sm:$0xff] (!%p1979_p11) }
 0x24f   : > { %2538 = vset.pattern.permute.xlu1 (!%p1979_p11), %v2785_v14  ;;  %2537 = vset.pattern.permute.xlu0 (!%p1979_p11), %v2785_v14  ;;  %vm1200_vm3 = vcmp.gt.f32.partialorder (!%p1979_p11), %v1184_v15, 0.0 }
 0x250   : > { %v2157_v17 = vpop.f32.mrb[14].mxu0  ;;  %2170 = vmatprep.subr.bf16.mxu1 %v1000_v16 }
 0x251   : > { %v953_v18 = vpop.f32.mrb[15].mxu0  ;;  %2171 = vmatpush3.bf16.msra.mxu1 %v1000_v16  ;;  %v1234_v16 = vsel (!%p1979_p11), %vm1201_vm0, 1, %v2785_v14 }
 0x252   : > { %v1001_v19 = vpack.c.bf16 %v2157_v17, %v953_v18  ;;  %v1232_v17 = vsel (!%p1979_p11), %vm1199_vm1, 1, %v2785_v14  ;;  %v1188_v18 = vld [vmem:[%s3159_s3 + $0x28] sm:$0xff] (!%p1979_p11)  ;;  %1255 = vperm.xlu1 (!%p1979_p11), %2538, %v1234_v16   ;;  %v1574_v16 = vld [vmem:[#allocation10 + $0x40] sm:$0xff] (!%p1979_p11) }
 0x253   : > { %1249 = vperm.xlu0 (!%p1979_p11), %2537, %v1232_v17   ;;  %vm1204_vm4 = vcmp.gt.f32.partialorder (!%p1979_p11), %v1188_v18, 0.0  ;;  %v1575_v17 = vld [vmem:[#allocation10 + $0x48] sm:$0xff] (!%p1979_p11) }
 0x254   : > { %2172 = vmatprep.subr.bf16.mxu1 %v1001_v19  ;;  %v2382_v18 = vpack.c.bf16 (!%p1979_p11), %v1575_v17, %v1574_v16  ;;  %v3399_v16 = vld [vmem:[%s3606_s28] ss:$0 sm:$0xff] (!%p1979_p11) }
 0x255   : > { %2173 = vmatpush3.bf16.msra.mxu1 %v1001_v19  ;;  %v1187_v19 = vld [vmem:[%s3159_s3 + $0x20] sm:$0xff] (!%p1979_p11) }
 0x256   : > { %vm1203_vm5 = vcmp.gt.f32.partialorder (!%p1979_p11), %v1187_v19, 0.0  ;;  %v1576_v19 = vld [vmem:[#allocation10 + $0x50] sm:$0xff] (!%p1979_p11) }
 0x258   : > { %2175 = vmatmul.mubr.bf16.vlgmr.msra.gmra.mrb[0].mxu1 %v2530_v20  ;;  %v1235_v20 = vsel (!%p1979_p11), %vm1202_vm2, 1, %v2785_v14 }
 0x259   : > { %2178 = vmatprep.mubr.bf16.mxu1 %v2531_v21  ;;  %v1233_v21 = vsel (!%p1979_p11), %vm1200_vm3, 1, %v2785_v14  ;;  %1258 = vperm.xlu1 (!%p1979_p11), %2538, %v1235_v20   ;;  %v1577_v20 = vld [vmem:[#allocation10 + $0x58] sm:$0xff] (!%p1979_p11) }
 0x25a   : > { %1252 = vperm.xlu0 (!%p1979_p11), %2537, %v1233_v21   ;;  %v2386_v21 = vpack.c.bf16 (!%p1979_p11), %v1577_v20, %v1576_v19 }
 0x260   : > { %2179 = vmatmul.mubr.bf16.gmra.mrb[4].mxu1 %v2532_v22  ;;  %v1190_v22 = vld [vmem:[%s3159_s3 + $0x38] sm:$0xff] (!%p1979_p11) }
 0x261   : > { %2182 = vmatprep.mubr.bf16.mxu1 %v2533_v23  ;;  %v1189_v23 = vld [vmem:[%s3159_s3 + $0x30] sm:$0xff] (!%p1979_p11)  ;;  %vm1206_vm6 = vcmp.gt.f32.partialorder (!%p1979_p11), %v1190_v22, 0.0  ;;  %v3282_v22 = vld [vmem:[%s3605_s8] ss:$0 sm:$0xff] (!%p1979_p11) }
 0x262   : > { %vm1205_vm7 = vcmp.gt.f32.partialorder (!%p1979_p11), %v1189_v23, 0.0  ;;  %v1216_v23 = vld [vmem:[%s3130_s25] sm:$0xff] (!%p1979_p11) }
 0x268   : > { %2183 = vmatmul.mubr.bf16.gmra.mrb[8].mxu1 %v2534_v24  ;;  %v1350_v24 = vld [vmem:[#allocation9] sm:$0xff] (!%p1979_p11) }
 0x269   : > { %2186 = vmatprep.mubr.bf16.mxu1 %v2535_v25  ;;  %v1351_v25 = vld [vmem:[#allocation9 + $0x8] sm:$0xff] (!%p1979_p11) }
 0x270   : > { %2187 = vmatmul.mubr.bf16.gmra.mrb[12].mxu1 %v2536_v26  ;;  %v1237_v26 = vsel (!%p1979_p11), %vm1204_vm4, 1, %v2785_v14 }
 0x271   : > { %1264 = vperm.xlu1 (!%p1979_p11), %2538, %v1237_v26  }
 0x32b   : > { %v2176_v29 = vpop.f32.mrb[0].mxu1 }
 0x32c   : > { %v1149_v31 = vadd.f32 %v2176_v29, %v964_v27  ;;  %v1084_v32 = vpop.f32.mrb[1].mxu1  ;;  %v1236_v27 = vsel (!%p1979_p11), %vm1203_vm5, 1, %v2785_v14  ;;  %v1353_v29 = vld [vmem:[#allocation9 + $0x18] sm:$0xff] (!%p1979_p11) }
 0x32d   : > { %v1147_v34 = vadd.f32 %v1084_v32, %v962_v28  ;;  %v2177_v35 = vpop.f32.mrb[2].mxu1  ;;  %v1352_v28 = vld [vmem:[#allocation9 + $0x10] sm:$0xff] (!%p1979_p11)  ;;  %v1191_v32 = vld [vmem:[%s3159_s3 + $0x40] sm:$0xff] (!%p1979_p11)  ;;  %1261 = vperm.xlu0 (!%p1979_p11), %2537, %v1236_v27  }
 0x32e   : > { %1165 = vst [vmem:[#allocation2 + $0x10] sm:$0xff] %v1149_v31  ;;  %v1150_v36 = vadd.f32 %v2177_v35, %v965_v30  ;;  %v1087_v37 = vpop.f32.mrb[3].mxu1  ;;  %v2334_v30 = vpack.c.bf16 (!%p1979_p11), %v1351_v25, %v1350_v24  ;;  %v1192_v31 = vld [vmem:[%s3159_s3 + $0x48] sm:$0xff] (!%p1979_p11)  ;;  %vm1207_vm9 = vcmp.gt.f32.partialorder (!%p1979_p11), %v1191_v32, 0.0  ;;  %v3285_v24 = vpop.permute.xlu1 (!%p1979_p11), %1255  ;;  %v1218_v27 = vld [vmem:[%s3130_s25 + $0x10] sm:$0xff] (!%p1979_p11) }
 0x32f   : > { %1163 = vst [vmem:[#allocation2] sm:$0xff] %v1147_v34  ;;  %v1148_v38 = vadd.f32 %v1087_v37, %v963_v33  ;;  %v2338_v33 = vpack.c.bf16 (!%p1979_p11), %v1353_v29, %v1352_v28  ;;  %v1354_v34 = vld [vmem:[#allocation9 + $0x20] sm:$0xff] (!%p1979_p11)  ;;  %v1355_v35 = vld [vmem:[#allocation9 + $0x28] sm:$0xff] (!%p1979_p11)  ;;  %v1238_v37 = vsel (!%p1979_p11), %vm1205_vm7, 1, %v2785_v14  ;;  %vm1208_vm8 = vcmp.gt.f32.partialorder (!%p1979_p11), %v1192_v31, 0.0  ;;  %v3287_v25 = vpop.permute.xlu0 (!%p1979_p11), %1249 }
 0x330   : > { %1166 = vst [vmem:[#allocation2 + $0x18] sm:$0xff] %v1150_v36  ;;  %v1239_v36 = vsel (!%p1979_p11), %vm1206_vm6, 1, %v2785_v14  ;;  %2335 = vmatprep.subr.bf16.mxu0 (!%p1979_p11), %v2334_v30  ;;  %vm1296_vm0 = vcmp.eq.s32.totalorder (!%p1979_p11), %v3287_v25, 1  ;;  %vm1298_vm1 = vcmp.eq.s32.totalorder (!%p1979_p11), %v3285_v24, 1  ;;  %v1217_v28 = vld [vmem:[%s3130_s25 + $0x8] sm:$0xff] (!%p1979_p11) }
 0x331   : > { %1164 = vst [vmem:[#allocation2 + $0x8] sm:$0xff] %v1148_v38  ;;  %2337 = vmatpush3.bf16.msra.mxu0 (!%p1979_p11), %v2334_v30  ;;  %v1194_v38 = vld [vmem:[%s3159_s3 + $0x58] sm:$0xff] (!%p1979_p11)  ;;  %1270 = vperm.xlu1 (!%p1979_p11), %2538, %v1239_v36   ;;  %v1318_v26 = vsel (!%p1979_p11), %vm1296_vm0, %v3282_v22, %v1216_v23  ;;  %v1320_v31 = vsel (!%p1979_p11), %vm1298_vm1, %v3282_v22, %v1218_v27 }
 0x332   : > { %2339 = vmatprep.subr.bf16.mxu0 (!%p1979_p11), %v2338_v33  ;;  %1267 = vperm.xlu0 (!%p1979_p11), %2537, %v1238_v37   ;;  %vm1210_vm10 = vcmp.gt.f32.partialorder (!%p1979_p11), %v1194_v38, 0.0  ;;  %v3296_v29 = vpop.permute.xlu1 (!%p1979_p11), %1258 }
 0x333   : > { %v2180_v41 = vpop.f32.mrb[4].mxu1  ;;  %2222 = vmatprep.mubr.f32.mxu0 (!%p1979_p11), %v1318_v26  ;;  %v3298_v30 = vpop.permute.xlu0 (!%p1979_p11), %1252  ;;  %vm1299_vm3 = vcmp.eq.s32.totalorder (!%p1979_p11), %v3296_v29, 1 }
 0x334   : > { %v1153_v43 = vadd.f32 %v2180_v41, %v968_v39  ;;  %v1100_v44 = vpop.f32.mrb[5].mxu1  ;;  %v1193_v39 = vld [vmem:[%s3159_s3 + $0x50] sm:$0xff] (!%p1979_p11)  ;;  %vm1297_vm2 = vcmp.eq.s32.totalorder (!%p1979_p11), %v3298_v30, 1 }
 0x335   : > { %v1151_v46 = vadd.f32 %v1100_v44, %v966_v40  ;;  %v2181_v47 = vpop.f32.mrb[6].mxu1  ;;  %v2342_v40 = vpack.c.bf16 (!%p1979_p11), %v1355_v35, %v1354_v34  ;;  %v1356_v41 = vld [vmem:[#allocation9 + $0x30] sm:$0xff] (!%p1979_p11)  ;;  %v1240_v44 = vsel (!%p1979_p11), %vm1207_vm9, 1, %v2785_v14  ;;  %vm1209_vm11 = vcmp.gt.f32.partialorder (!%p1979_p11), %v1193_v39, 0.0  ;;  %2341 = vmatpush3.bf16.msra.mxu0 (!%p1979_p11), %v2338_v33  ;;  %v1219_v33 = vld [vmem:[%s3130_s25 + $0x18] sm:$0xff] (!%p1979_p11)  ;;  %v1220_v34 = vld [vmem:[%s3130_s25 + $0x20] sm:$0xff] (!%p1979_p11) }
 0x336   : > { %1169 = vst [vmem:[#allocation2 + $0x30] sm:$0xff] %v1153_v43  ;;  %v1154_v48 = vadd.f32 %v2181_v47, %v969_v42  ;;  %v1103_v49 = vpop.f32.mrb[7].mxu1  ;;  %v1357_v42 = vld [vmem:[#allocation9 + $0x38] sm:$0xff] (!%p1979_p11)  ;;  %v1241_v43 = vsel (!%p1979_p11), %vm1208_vm8, 1, %v2785_v14  ;;  %1273 = vperm.xlu0 (!%p1979_p11), %2537, %v1240_v44   ;;  %v1319_v32 = vsel (!%p1979_p11), %vm1297_vm2, %v3282_v22, %v1217_v28  ;;  %v3310_v35 = vpop.permute.xlu1 (!%p1979_p11), %1264  ;;  %v1321_v37 = vsel (!%p1979_p11), %vm1299_vm3, %v3282_v22, %v1219_v33  ;;  %v1221_v39 = vld [vmem:[%s3130_s25 + $0x28] sm:$0xff] (!%p1979_p11) }
 0x337   : > { %1167 = vst [vmem:[#allocation2 + $0x20] sm:$0xff] %v1151_v46  ;;  %v1152_v50 = vadd.f32 %v1103_v49, %v967_v45  ;;  %v1196_v45 = vld [vmem:[%s3159_s3 + $0x68] sm:$0xff] (!%p1979_p11)  ;;  %v1195_v46 = vld [vmem:[%s3159_s3 + $0x60] sm:$0xff] (!%p1979_p11)  ;;  %2343 = vmatprep.subr.bf16.mxu0 (!%p1979_p11), %v2342_v40  ;;  %v2346_v47 = vpack.c.bf16 (!%p1979_p11), %v1357_v42, %v1356_v41  ;;  %1276 = vperm.xlu1 (!%p1979_p11), %2538, %v1241_v43   ;;  %vm1301_vm5 = vcmp.eq.s32.totalorder (!%p1979_p11), %v3310_v35, 1  ;;  %v1337_v20 = vld [vmem:[#allocation2 + $0x18] sm:$0xff] (!%p1979_p11) }
 0x338   : > { %1170 = vst [vmem:[#allocation2 + $0x38] sm:$0xff] %v1154_v48  ;;  %v1358_v48 = vld [vmem:[#allocation9 + $0x40] sm:$0xff] (!%p1979_p11)  ;;  %v1359_v49 = vld [vmem:[#allocation9 + $0x48] sm:$0xff] (!%p1979_p11)  ;;  %vm1212_vm12 = vcmp.gt.f32.partialorder (!%p1979_p11), %v1196_v45, 0.0  ;;  %vm1211_vm13 = vcmp.gt.f32.partialorder (!%p1979_p11), %v1195_v46, 0.0  ;;  %v1323_v43 = vsel (!%p1979_p11), %vm1301_vm5, %v3282_v22, %v1221_v39  ;;  %v1223_v45 = vld [vmem:[%s3130_s25 + $0x38] sm:$0xff] (!%p1979_p11) }
 0x339   : > { %1168 = vst [vmem:[#allocation2 + $0x28] sm:$0xff] %v1152_v50  ;;  %v1243_v50 = vsel (!%p1979_p11), %vm1210_vm10, 1, %v2785_v14  ;;  %2345 = vmatpush3.bf16.msra.mxu0 (!%p1979_p11), %v2342_v40  ;;  %v1222_v40 = vld [vmem:[%s3130_s25 + $0x30] sm:$0xff] (!%p1979_p11)  ;;  %v1224_v46 = vld [vmem:[%s3130_s25 + $0x40] sm:$0xff] (!%p1979_p11) }
 0x33a   : > { %2347 = vmatprep.subr.bf16.mxu0 (!%p1979_p11), %v2346_v47 }
 0x33b   : > { %v2184_v53 = vpop.f32.mrb[8].mxu1  ;;  %1282 = vperm.xlu1 (!%p1979_p11), %2538, %v1243_v50  }
 0x33c   : > { %v1157_v55 = vadd.f32 %v2184_v53, %v972_v51  ;;  %v1116_v56 = vpop.f32.mrb[9].mxu1  ;;  %v1242_v51 = vsel (!%p1979_p11), %vm1209_vm11, 1, %v2785_v14  ;;  %v1197_v53 = vld [vmem:[%s3159_s3 + $0x70] sm:$0xff] (!%p1979_p11) }
 0x33d   : > { %v1155_v58 = vadd.f32 %v1116_v56, %v970_v52  ;;  %v2185_v59 = vpop.f32.mrb[10].mxu1  ;;  %v1198_v52 = vld [vmem:[%s3159_s3 + $0x78] sm:$0xff] (!%p1979_p11)  ;;  %1279 = vperm.xlu0 (!%p1979_p11), %2537, %v1242_v51   ;;  %vm1213_vm15 = vcmp.gt.f32.partialorder (!%p1979_p11), %v1197_v53, 0.0  ;;  %2349 = vmatpush3.bf16.msra.mxu0 (!%p1979_p11), %v2346_v47  ;;  %v1225_v51 = vld [vmem:[%s3130_s25 + $0x48] sm:$0xff] (!%p1979_p11) }
 0x33e   : > { %1173 = vst [vmem:[#allocation2 + $0x50] sm:$0xff] %v1157_v55  ;;  %v1158_v60 = vadd.f32 %v2185_v59, %v973_v54  ;;  %v1119_v61 = vpop.f32.mrb[11].mxu1  ;;  %v2350_v54 = vpack.c.bf16 (!%p1979_p11), %v1359_v49, %v1358_v48  ;;  %v1360_v55 = vld [vmem:[#allocation9 + $0x50] sm:$0xff] (!%p1979_p11)  ;;  %v1361_v56 = vld [vmem:[#allocation9 + $0x58] sm:$0xff] (!%p1979_p11)  ;;  %vm1214_vm14 = vcmp.gt.f32.partialorder (!%p1979_p11), %v1198_v52, 0.0 }
 0x33f   : > { %1171 = vst [vmem:[#allocation2 + $0x40] sm:$0xff] %v1155_v58  ;;  %v1156_v62 = vadd.f32 %v1119_v61, %v971_v57  ;;  %v1245_v57 = vsel (!%p1979_p11), %vm1212_vm12, 1, %v2785_v14  ;;  %v1244_v58 = vsel (!%p1979_p11), %vm1211_vm13, 1, %v2785_v14  ;;  %v2354_v59 = vpack.c.bf16 (!%p1979_p11), %v1361_v56, %v1360_v55  ;;  %v1363_v61 = vld [vmem:[#allocation9 + $0x68] sm:$0xff] (!%p1979_p11)  ;;  %v1226_v52 = vld [vmem:[%s3130_s25 + $0x50] sm:$0xff] (!%p1979_p11) }
 0x340   : > { %1174 = vst [vmem:[#allocation2 + $0x58] sm:$0xff] %v1158_v60  ;;  %2351 = vmatprep.subr.bf16.mxu0 (!%p1979_p11), %v2350_v54  ;;  %1288 = vperm.xlu1 (!%p1979_p11), %2538, %v1245_v57   ;;  %v1362_v60 = vld [vmem:[#allocation9 + $0x60] sm:$0xff] (!%p1979_p11)  ;;  %v1227_v57 = vld [vmem:[%s3130_s25 + $0x58] sm:$0xff] (!%p1979_p11) }
 0x341   : > { %1172 = vst [vmem:[#allocation2 + $0x48] sm:$0xff] %v1156_v62  ;;  %1285 = vperm.xlu0 (!%p1979_p11), %2537, %v1244_v58   ;;  %v1247_v62 = vsel (!%p1979_p11), %vm1214_vm14, 1, %v2785_v14  ;;  %2353 = vmatpush3.bf16.msra.mxu0 (!%p1979_p11), %v2350_v54  ;;  %v1228_v58 = vld [vmem:[%s3130_s25 + $0x60] sm:$0xff] (!%p1979_p11) }
 0x342   : > { %2355 = vmatprep.subr.bf16.mxu0 (!%p1979_p11), %v2354_v59 }
 0x343   : > { %v2188_v1 = vpop.f32.mrb[12].mxu1  ;;  %1182 = sbr.rel (%p1979_p11) target bundleno = 1403 (0x57b), region = 125 }
 0x344   : > { %v1161_v3 = vadd.f32 %v2188_v1, %v976_v63  ;;  %v1132_v4 = vpop.f32.mrb[13].mxu1  ;;  %v1246_v63 = vsel (!%p1979_p11), %vm1213_vm15, 1, %v2785_v14  ;;  %1294 = vperm.xlu1 (!%p1979_p11), %2538, %v1247_v62   ;;  %v1364_v1 = vld [vmem:[#allocation9 + $0x70] sm:$0xff] (!%p1979_p11)  ;;  %v1573_v14 = vld [vmem:[#allocation10 + $0x38] sm:$0xff] (!%p1979_p11) }
 0x345   : > { %v1159_v6 = vadd.f32 %v1132_v4, %v974_v0  ;;  %v2189_v7 = vpop.f32.mrb[14].mxu1  ;;  %v2358_v0 = vpack.c.bf16 (!%p1979_p11), %v1363_v61, %v1362_v60  ;;  %1291 = vperm.xlu0 (!%p1979_p11), %2537, %v1246_v63   ;;  %2357 = vmatpush3.bf16.msra.mxu0 (!%p1979_p11), %v2354_v59  ;;  %v1566_v4 = vld [vmem:[#allocation10] sm:$0xff] (!%p1979_p11)  ;;  %v2378_v15 = vpack.c.bf16 (!%p1979_p11), %v1573_v14, %v1572_v13  ;;  %v1229_v63 = vld [vmem:[%s3130_s25 + $0x68] sm:$0xff] (!%p1979_p11) }
 0x346   : > { %1177 = vst [vmem:[#allocation2 + $0x70] sm:$0xff] %v1161_v3  ;;  %v1162_v8 = vadd.f32 %v2189_v7, %v977_v2  ;;  %v1135_v9 = vpop.f32.mrb[15].mxu1  ;;  %v1365_v2 = vld [vmem:[#allocation9 + $0x78] sm:$0xff] (!%p1979_p11)  ;;  %v1335_v13 = vld [vmem:[#allocation2 + $0x8] sm:$0xff] (!%p1979_p11)  ;;  %v1334_v14 = vld [vmem:[#allocation2] sm:$0xff] (!%p1979_p11) }
 0x347   : > { %1175 = vst [vmem:[#allocation2 + $0x60] sm:$0xff] %v1159_v6  ;;  %v1160_v10 = vadd.f32 %v1135_v9, %v975_v5  ;;  %2359 = vmatprep.subr.bf16.mxu0 (!%p1979_p11), %v2358_v0  ;;  %v2362_v3 = vpack.c.bf16 (!%p1979_p11), %v1365_v2, %v1364_v1  ;;  %v1567_v5 = vld [vmem:[#allocation10 + $0x8] sm:$0xff] (!%p1979_p11)  ;;  %v1568_v6 = vld [vmem:[#allocation10 + $0x10] sm:$0xff] (!%p1979_p11) }
 0x348   : > { %1178 = vst [vmem:[#allocation2 + $0x78] sm:$0xff] %v1162_v8  ;;  %v2366_v7 = vpack.c.bf16 (!%p1979_p11), %v1567_v5, %v1566_v4  ;;  %v1569_v8 = vld [vmem:[#allocation10 + $0x18] sm:$0xff] (!%p1979_p11) }
 0x349   : > { %1176 = vst [vmem:[#allocation2 + $0x68] sm:$0xff] %v1160_v10  ;;  %2361 = vmatpush3.bf16.msra.mxu0 (!%p1979_p11), %v2358_v0  ;;  %v2370_v9 = vpack.c.bf16 (!%p1979_p11), %v1569_v8, %v1568_v6  ;;  %v1570_v10 = vld [vmem:[#allocation10 + $0x20] sm:$0xff] (!%p1979_p11)  ;;  %v1230_v0 = vld [vmem:[%s3130_s25 + $0x70] sm:$0xff] (!%p1979_p11)  ;;  %v1231_v5 = vld [vmem:[%s3130_s25 + $0x78] sm:$0xff] (!%p1979_p11) }
 0x34a   : > { %2363 = vmatprep.subr.bf16.mxu0 %v2362_v3  ;;  %2367 = vmatprep.subr.bf16.mxu1 %v2366_v7  ;;  %v2374_v12 = vpack.c.bf16 %v1571_v11, %v1570_v10  ;;  %v1579_v8 = vld [vmem:[#allocation10 + $0x68] sm:$0xff]  ;;  %v1580_v10 = vld [vmem:[#allocation10 + $0x70] sm:$0xff]  ;;  %v1581_v11 = vld [vmem:[#allocation10 + $0x78] sm:$0xff] }
 0x34b   : > { %2369 = vmatpush3.bf16.msra.mxu1 %v2366_v7  ;;  %v1578_v7 = vld [vmem:[#allocation10 + $0x60] sm:$0xff] }
 0x34c   : > { %2371 = vmatprep.subr.bf16.mxu1 %v2370_v9 }
 0x34d   : > { %2365 = vmatpush3.bf16.msra.mxu0 %v2362_v3 }
 0x34f   : > { %2373 = vmatpush3.bf16.msra.mxu1 %v2370_v9  ;;  %v2390_v9 = vpack.c.bf16 %v1579_v8, %v1578_v7 }
 0x350   : > { %2375 = vmatprep.subr.bf16.mxu1 %v2374_v12  ;;  %2223 = vmatmul.mubr.f32.vlgmr.msra.gmra.mrb[0].mxu0 %v1319_v32  ;;  %v1339_v32 = vld [vmem:[#allocation2 + $0x28] sm:$0xff] }
 0x351   : > { %2225 = vmatprep.mubr.f32.mxu0 %v1320_v31 }
 0x353   : > { %2377 = vmatpush3.bf16.msra.mxu1 %v2374_v12  ;;  %v2394_v12 = vpack.c.bf16 %v1581_v11, %v1580_v10  ;;  %v1345_v11 = vld [vmem:[#allocation2 + $0x58] sm:$0xff] }
 0x354   : > { %2379 = vmatprep.subr.bf16.mxu1 %v2378_v15  ;;  %2226 = vmatmul.mubr.f32.gmra.mrb[2].mxu0 %v1321_v37 }
 0x357   : > { %2381 = vmatpush3.bf16.msra.mxu1 %v2378_v15 }
 0x358   : > { %2383 = vmatprep.subr.bf16.mxu1 %v2382_v18 }
 0x35b   : > { %2385 = vmatpush3.bf16.msra.mxu1 %v2382_v18 }
 0x35c   : > { %2387 = vmatprep.subr.bf16.mxu1 %v2386_v21 }
 0x35f   : > { %2389 = vmatpush3.bf16.msra.mxu1 %v2386_v21 }
 0x360   : > { %2391 = vmatprep.subr.bf16.mxu1 %v2390_v9 }
 0x363   : > { %2393 = vmatpush3.bf16.msra.mxu1 %v2390_v9 }
 0x364   : > { %2395 = vmatprep.subr.bf16.mxu1 %v2394_v12 }
 0x367   : > { %2397 = vmatpush3.bf16.msra.mxu1 %v2394_v12 }
 0x3ac   : > { %v3312_v36 = vpop.permute.xlu0 %1261 }
 0x3ad   : > { %vm1300_vm4 = vcmp.eq.s32.totalorder %v3312_v36, 1 }
 0x3ae   : > { %v1322_v38 = vsel %vm1300_vm4, %v3282_v22, %v1220_v34 }
 0x3af   : > { %2228 = vmatprep.mubr.f32.mxu0 %v1322_v38  ;;  %v1338_v38 = vld [vmem:[#allocation2 + $0x20] sm:$0xff] }
 0x3b0   : > { %v3324_v41 = vpop.permute.xlu1 %1270  ;;  %2229 = vmatmul.mubr.f32.gmra.mrb[4].mxu0 %v1323_v43 }
 0x3b1   : > { %v3326_v42 = vpop.permute.xlu0 %1267  ;;  %vm1303_vm7 = vcmp.eq.s32.totalorder %v3324_v41, 1 }
 0x3b2   : > { %vm1302_vm6 = vcmp.eq.s32.totalorder %v3326_v42, 1  ;;  %v1325_v49 = vsel %vm1303_vm7, %v3282_v22, %v1223_v45 }
 0x3b3   : > { %v1324_v44 = vsel %vm1302_vm6, %v3282_v22, %v1222_v40 }
 0x3b4   : > { %2231 = vmatprep.mubr.f32.mxu0 %v1324_v44 }
 0x3b5   : > { %v3340_v48 = vpop.permute.xlu0 %1273  ;;  %2232 = vmatmul.mubr.f32.gmra.mrb[6].mxu0 %v1325_v49  ;;  %v1341_v49 = vld [vmem:[#allocation2 + $0x38] sm:$0xff] }
 0x3b6   : > { %v3338_v47 = vpop.permute.xlu1 %1276  ;;  %vm1304_vm8 = vcmp.eq.s32.totalorder %v3340_v48, 1 }
 0x3b7   : > { %v1326_v50 = vsel %vm1304_vm8, %v3282_v22, %v1224_v46  ;;  %vm1305_vm9 = vcmp.eq.s32.totalorder %v3338_v47, 1 }
 0x3b8   : > { %2234 = vmatprep.mubr.f32.mxu0 %v1326_v50  ;;  %v1327_v55 = vsel %vm1305_vm9, %v3282_v22, %v1225_v51 }
 0x3b9   : > { %2235 = vmatmul.mubr.f32.gmra.mrb[8].mxu0 %v1327_v55 }
 0x3ba   : > { %v3352_v53 = vpop.permute.xlu1 %1282 }
 0x3bb   : > { %vm1307_vm11 = vcmp.eq.s32.totalorder %v3352_v53, 1 }
 0x3bc   : > { %v3354_v54 = vpop.permute.xlu0 %1279  ;;  %v1329_v61 = vsel %vm1307_vm11, %v3282_v22, %v1227_v57 }
 0x3bd   : > { %vm1306_vm10 = vcmp.eq.s32.totalorder %v3354_v54, 1 }
 0x3be   : > { %v1328_v56 = vsel %vm1306_vm10, %v3282_v22, %v1226_v52  ;;  %v1340_v52 = vld [vmem:[#allocation2 + $0x30] sm:$0xff] }
 0x3bf   : > { %v3366_v59 = vpop.permute.xlu1 %1288  ;;  %2237 = vmatprep.mubr.f32.mxu0 %v1328_v56 }
 0x3c0   : > { %v3368_v60 = vpop.permute.xlu0 %1285  ;;  %vm1309_vm13 = vcmp.eq.s32.totalorder %v3366_v59, 1  ;;  %2238 = vmatmul.mubr.f32.gmra.mrb[10].mxu0 %v1329_v61 }
 0x3c1   : > { %vm1308_vm12 = vcmp.eq.s32.totalorder %v3368_v60, 1  ;;  %v1331_v3 = vsel %vm1309_vm13, %v3282_v22, %v1229_v63  ;;  %v1343_v63 = vld [vmem:[#allocation2 + $0x48] sm:$0xff] }
 0x3c2   : > { %v1330_v62 = vsel %vm1308_vm12, %v3282_v22, %v1228_v58 }
 0x3c3   : > { %v3380_v1 = vpop.permute.xlu1 %1294  ;;  %2240 = vmatprep.mubr.f32.mxu0 %v1330_v62 }
 0x3c4   : > { %v3382_v2 = vpop.permute.xlu0 %1291  ;;  %vm1311_vm15 = vcmp.eq.s32.totalorder %v3380_v1, 1  ;;  %2241 = vmatmul.mubr.f32.gmra.mrb[12].mxu0 %v1331_v3 }
 0x3c5   : > { %vm1310_vm14 = vcmp.eq.s32.totalorder %v3382_v2, 1  ;;  %v1333_v6 = vsel %vm1311_vm15, %v3282_v22, %v1231_v5 }
 0x3c6   : > { %v1332_v4 = vsel %vm1310_vm14, %v3282_v22, %v1230_v0  ;;  %v1336_v22 = vld [vmem:[#allocation2 + $0x10] sm:$0xff] }
 0x3c7   : > { %2243 = vmatprep.mubr.f32.mxu0 %v1332_v4  ;;  %v1342_v4 = vld [vmem:[#allocation2 + $0x40] sm:$0xff] }
 0x3c8   : > { %2244 = vmatmul.mubr.f32.gmra.mrb[14].mxu0 %v1333_v6 }
 0x423   : > { %v2224_v15 = vpop.f32.mrb[0].mxu0 }
 0x424   : > { %v1512_v17 = vadd.f32 %v2224_v15, %v1335_v13  ;;  %v1432_v18 = vpop.f32.mrb[1].mxu0 }
 0x425   : > { %v1511_v19 = vadd.f32 %v1432_v18, %v1334_v14  ;;  %v1344_v14 = vld [vmem:[#allocation2 + $0x50] sm:$0xff] }
 0x426   : > { %v1535_v21 = vadd.f32 %v3399_v16, %v1512_v17 }
 0x427   : > { %v2227_v23 = vpop.f32.mrb[2].mxu0  ;;  %v1534_v26 = vadd.f32 %v3399_v16, %v1511_v19 }
 0x428   : > { %v1514_v27 = vadd.f32 %v2227_v23, %v1337_v20  ;;  %v1442_v28 = vpop.f32.mrb[3].mxu0  ;;  %v1551_v34 = vmax.f32 %v1535_v21, 0.0 }
 0x429   : > { %v1513_v31 = vadd.f32 %v1442_v28, %v1336_v22  ;;  %v1550_v33 = vmax.f32 %v1534_v26, 0.0  ;;  %v1347_v22 = vld [vmem:[#allocation2 + $0x68] sm:$0xff] }
 0x42a   : > { %v1537_v37 = vadd.f32 %v3399_v16, %v1514_v27  ;;  %v1346_v27 = vld [vmem:[#allocation2 + $0x60] sm:$0xff] }
 0x42b   : > { %v1536_v39 = vadd.f32 %v3399_v16, %v1513_v31  ;;  %2278 = vmatprep.mubr.f32.mxu1 %v1550_v33 }
 0x42c   : > { %2279 = vmatmul.mubr.f32.vlgmr.msra.gmra.mrb[0].mxu1 %v1551_v34  ;;  %v1553_v50 = vmax.f32 %v1537_v37, 0.0 }
 0x42d   : > { %v1552_v45 = vmax.f32 %v1536_v39, 0.0 }
 0x42f   : > { %2281 = vmatprep.mubr.f32.mxu1 %v1552_v45 }
 0x430   : > { %2282 = vmatmul.mubr.f32.gmra.mrb[2].mxu1 %v1553_v50 }
 0x483   : > { %v2230_v40 = vpop.f32.mrb[4].mxu0 }
 0x484   : > { %v1516_v43 = vadd.f32 %v2230_v40, %v1339_v32  ;;  %v1452_v44 = vpop.f32.mrb[5].mxu0 }
 0x485   : > { %v1515_v46 = vadd.f32 %v1452_v44, %v1338_v38  ;;  %v1349_v38 = vld [vmem:[#allocation2 + $0x78] sm:$0xff] }
 0x486   : > { %v1539_v51 = vadd.f32 %v3399_v16, %v1516_v43  ;;  %v1348_v43 = vld [vmem:[#allocation2 + $0x70] sm:$0xff] }
 0x487   : > { %v1538_v55 = vadd.f32 %v3399_v16, %v1515_v46 }
 0x488   : > { %v2233_v56 = vpop.f32.mrb[6].mxu0  ;;  %v1555_v0 = vmax.f32 %v1539_v51, 0.0 }
 0x489   : > { %v1518_v57 = vadd.f32 %v2233_v56, %v1341_v49  ;;  %v1462_v58 = vpop.f32.mrb[7].mxu0  ;;  %v1554_v61 = vmax.f32 %v1538_v55, 0.0 }
 0x48a   : > { %v1517_v62 = vadd.f32 %v1462_v58, %v1340_v52 }
 0x48b   : > { %v1541_v3 = vadd.f32 %v3399_v16, %v1518_v57  ;;  %2284 = vmatprep.mubr.f32.mxu1 %v1554_v61 }
 0x48c   : > { %v1540_v5 = vadd.f32 %v3399_v16, %v1517_v62  ;;  %v2236_v6 = vpop.f32.mrb[8].mxu0  ;;  %2285 = vmatmul.mubr.f32.gmra.mrb[4].mxu1 %v1555_v0 }
 0x48d   : > { %v1520_v7 = vadd.f32 %v2236_v6, %v1343_v63  ;;  %v1472_v8 = vpop.f32.mrb[9].mxu0  ;;  %v1557_v12 = vmax.f32 %v1541_v3, 0.0 }
 0x48e   : > { %v1556_v9 = vmax.f32 %v1540_v5, 0.0  ;;  %v1519_v10 = vadd.f32 %v1472_v8, %v1342_v4 }
 0x48f   : > { %v1543_v13 = vadd.f32 %v3399_v16, %v1520_v7 }
 0x490   : > { %v1542_v15 = vadd.f32 %v3399_v16, %v1519_v10  ;;  %2287 = vmatprep.mubr.f32.mxu1 %v1556_v9 }
 0x491   : > { %2288 = vmatmul.mubr.f32.gmra.mrb[6].mxu1 %v1557_v12  ;;  %v1559_v23 = vmax.f32 %v1543_v13, 0.0 }
 0x492   : > { %v1558_v20 = vmax.f32 %v1542_v15, 0.0 }
 0x493   : > { %v2239_v17 = vpop.f32.mrb[10].mxu0 }
 0x494   : > { %v1522_v18 = vadd.f32 %v2239_v17, %v1345_v11  ;;  %v1482_v19 = vpop.f32.mrb[11].mxu0  ;;  %2290 = vmatprep.mubr.f32.mxu1 %v1558_v20 }
 0x495   : > { %v1521_v21 = vadd.f32 %v1482_v19, %v1344_v14  ;;  %2291 = vmatmul.mubr.f32.gmra.mrb[8].mxu1 %v1559_v23 }
 0x496   : > { %v1545_v26 = vadd.f32 %v3399_v16, %v1522_v18 }
 0x497   : > { %v1544_v28 = vadd.f32 %v3399_v16, %v1521_v21  ;;  %v2242_v31 = vpop.f32.mrb[12].mxu0 }
 0x498   : > { %v1524_v32 = vadd.f32 %v2242_v31, %v1347_v22  ;;  %v1492_v33 = vpop.f32.mrb[13].mxu0  ;;  %v1561_v39 = vmax.f32 %v1545_v26, 0.0 }
 0x499   : > { %v1560_v34 = vmax.f32 %v1544_v28, 0.0  ;;  %v1523_v37 = vadd.f32 %v1492_v33, %v1346_v27 }
 0x49a   : > { %v1547_v40 = vadd.f32 %v3399_v16, %v1524_v32 }
 0x49b   : > { %v1546_v44 = vadd.f32 %v3399_v16, %v1523_v37  ;;  %v2245_v45 = vpop.f32.mrb[14].mxu0  ;;  %2293 = vmatprep.mubr.f32.mxu1 %v1560_v34 }
 0x49c   : > { %v1526_v46 = vadd.f32 %v2245_v45, %v1349_v38  ;;  %v1502_v49 = vpop.f32.mrb[15].mxu0  ;;  %2294 = vmatmul.mubr.f32.gmra.mrb[10].mxu1 %v1561_v39  ;;  %v1563_v52 = vmax.f32 %v1547_v40, 0.0 }
 0x49d   : > { %v1562_v50 = vmax.f32 %v1546_v44, 0.0  ;;  %v1525_v51 = vadd.f32 %v1502_v49, %v1348_v43 }
 0x49e   : > { %v1549_v55 = vadd.f32 %v3399_v16, %v1526_v46 }
 0x49f   : > { %v1548_v56 = vadd.f32 %v3399_v16, %v1525_v51  ;;  %2296 = vmatprep.mubr.f32.mxu1 %v1562_v50 }
 0x4a0   : > { %2297 = vmatmul.mubr.f32.gmra.mrb[12].mxu1 %v1563_v52  ;;  %v1565_v58 = vmax.f32 %v1549_v55, 0.0 }
 0x4a1   : > { %v1564_v57 = vmax.f32 %v1548_v56, 0.0 }
 0x4a3   : > { %2299 = vmatprep.mubr.f32.mxu1 %v1564_v57 }
 0x4a4   : > { %2300 = vmatmul.mubr.f32.gmra.mrb[14].mxu1 %v1565_v58 }
 0x4ff   : > { %v2280_v61 = vpop.f32.mrb[0].mxu1 }
 0x500   : > { %v1728_v62 = vsel %vm1297_vm2, 0.0, %v2280_v61  ;;  %v1648_v63 = vpop.f32.mrb[1].mxu1 }
 0x501   : > { %1744 = vst [vmem:[%s3161_s23 + $0x8] sm:$0xff] %v1728_v62  ;;  %v1727_v0 = vsel %vm1296_vm0, 0.0, %v1648_v63 }
 0x502   : > { %1743 = vst [vmem:[%s3161_s23] sm:$0xff] %v1727_v0 }
 0x503   : > { %v2283_v16 = vpop.f32.mrb[2].mxu1 }
 0x504   : > { %v1730_v3 = vsel %vm1299_vm3, 0.0, %v2283_v16  ;;  %v1658_v4 = vpop.f32.mrb[3].mxu1 }
 0x505   : > { %1746 = vst [vmem:[%s3161_s23 + $0x18] sm:$0xff] %v1730_v3  ;;  %v1729_v5 = vsel %vm1298_vm1, 0.0, %v1658_v4 }
 0x506   : > { %1745 = vst [vmem:[%s3161_s23 + $0x10] sm:$0xff] %v1729_v5 }
 0x55f   : > { %v2286_v30 = vpop.f32.mrb[4].mxu1 }
 0x560   : > { %v1732_v6 = vsel %vm1301_vm5, 0.0, %v2286_v30  ;;  %v1668_v25 = vpop.f32.mrb[5].mxu1 }
 0x561   : > { %1748 = vst [vmem:[%s3161_s23 + $0x28] sm:$0xff] %v1732_v6  ;;  %v1731_v7 = vsel %vm1300_vm4, 0.0, %v1668_v25 }
 0x562   : > { %1747 = vst [vmem:[%s3161_s23 + $0x20] sm:$0xff] %v1731_v7 }
 0x564   : > { %v2289_v29 = vpop.f32.mrb[6].mxu1 }
 0x565   : > { %v1734_v8 = vsel %vm1303_vm7, 0.0, %v2289_v29  ;;  %v1678_v24 = vpop.f32.mrb[7].mxu1 }
 0x566   : > { %1750 = vst [vmem:[%s3161_s23 + $0x38] sm:$0xff] %v1734_v8  ;;  %v1733_v9 = vsel %vm1302_vm6, 0.0, %v1678_v24 }
 0x567   : > { %1749 = vst [vmem:[%s3161_s23 + $0x30] sm:$0xff] %v1733_v9 }
 0x568   : > { %v2292_v35 = vpop.f32.mrb[8].mxu1 }
 0x569   : > { %v1736_v10 = vsel %vm1305_vm9, 0.0, %v2292_v35  ;;  %v1688_v36 = vpop.f32.mrb[9].mxu1 }
 0x56a   : > { %1752 = vst [vmem:[%s3161_s23 + $0x48] sm:$0xff] %v1736_v10  ;;  %v1735_v11 = vsel %vm1304_vm8, 0.0, %v1688_v36 }
 0x56b   : > { %1751 = vst [vmem:[%s3161_s23 + $0x40] sm:$0xff] %v1735_v11 }
 0x56f   : > { %v2295_v41 = vpop.f32.mrb[10].mxu1 }
 0x570   : > { %v1738_v12 = vsel %vm1307_vm11, 0.0, %v2295_v41  ;;  %v1698_v42 = vpop.f32.mrb[11].mxu1 }
 0x571   : > { %1754 = vst [vmem:[%s3161_s23 + $0x58] sm:$0xff] %v1738_v12  ;;  %v1737_v13 = vsel %vm1306_vm10, 0.0, %v1698_v42 }
 0x572   : > { %1753 = vst [vmem:[%s3161_s23 + $0x50] sm:$0xff] %v1737_v13 }
 0x573   : > { %v2298_v47 = vpop.f32.mrb[12].mxu1 }
 0x574   : > { %v1740_v14 = vsel %vm1309_vm13, 0.0, %v2298_v47  ;;  %v1708_v15 = vpop.f32.mrb[13].mxu1 }
 0x575   : > { %1756 = vst [vmem:[%s3161_s23 + $0x68] sm:$0xff] %v1740_v14  ;;  %v1739_v48 = vsel %vm1308_vm12, 0.0, %v1708_v15 }
 0x576   : > { %1755 = vst [vmem:[%s3161_s23 + $0x60] sm:$0xff] %v1739_v48 }
 0x577   : > { %v2301_v17 = vpop.f32.mrb[14].mxu1 }
 0x578   : > { %v1742_v53 = vsel %vm1311_vm15, 0.0, %v2301_v17  ;;  %v1718_v18 = vpop.f32.mrb[15].mxu1 }
 0x579   : > { %1758 = vst [vmem:[%s3161_s23 + $0x78] sm:$0xff] %v1742_v53  ;;  %v1741_v54 = vsel %vm1310_vm14, 0.0, %v1718_v18 }
 0x57a   : > { %1757 = vst [vmem:[%s3161_s23 + $0x70] sm:$0xff] %v1741_v54 }
 0x57b PF: > { %s3607_s4 = sld [smem:[#allocation19_spill]]  ;;  %s3608_s29 = sld [smem:[#allocation26_spill]] }
 0x57c   : > { %s3609_s2 = sld [smem:[#allocation35_spill]]  ;;  %s1773_s19 = sshll.u32 %s3161_s23, 4  ;;  %s3472_s19 = int_to_ptr.vmem [resolvable:$true] %s1773_s19 }
 0x57d   : > { %s1760_s10 = scalar_lea.sflag [#allocation6], %s3124_s18  ;;  %s2651_s11 = scalar_lea.vmem %s3472_s19, 2048 }
 0x57e   : > { %p2652_p8 = scmp.ne.s32.totalorder %s3472_s19, %s2651_s11  ;;  %s2786_s0 = smov [#allocation12]  }
 0x57f   : > { %s2655_s24 = sshll.u32 %s2786_s0, 4  ;;  %s2656_s24 = int_to_ptr.vmem [resolvable:$false] %s2655_s24 }
 0x580   : > { %s2657_s16 = scalar_lea.vmem %s2656_s24, 4096  ;;  %p2658_p3 = scmp.lt.s32.totalorder %s3472_s19, %s2656_s24 }
 0x581   : > { %s1989_s5 = sshll.u32 %s3607_s4, 11  ;;  %p3610_p12 = scmp.ne.s32.totalorder %s3608_s29, 0 }
 0x582   : > { %s3469_s30 = scalar_lea.hbm %s3609_s2, %s1989_s5  ;;  %p2659_p9 = scmp.lt.s32.totalorder %s2657_s16, %s2651_s11 }
 0x583   : > { %p2653_p13 = pnand %p2652_p8, %p3610_p12 }
 0x584   : > { %p2660_p0 = por %p2659_p9, %p2658_p3 }
 0x585   : > { %p2654_p10 = pneg %p2653_p13 }
 0x587   : > { %p2661_p4 = pnand %p2660_p0, %p2654_p10 }
 0x589   : > { %2664 = shalt.err (!%p2661_p4)
}
 0x58a   : > { %s2665_s23 = scalar_lea.hbm %s3469_s30, 2048  ;;  %s2669_s27 = scalar_lea.hbm %s3609_s2, 4096 }
 0x58b   : > { %p2666_p7 = scmp.ne.s32.totalorder %s3469_s30, %s2665_s23  ;;  %p2670_p5 = scmp.lt.u32.totalorder %s3469_s30, %s3609_s2 }
 0x58c   : > { %p2671_p6 = scmp.lt.u32.totalorder %s2669_s27, %s2665_s23  ;;  %p2673_p8 = scmp.lt.u32.totalorder %s2665_s23, %s3469_s30 }
 0x58d   : > { %p2667_p1 = pnand %p2666_p7, %p3610_p12 }
 0x58e   : > { %p2672_p11 = por %p2671_p6, %p2670_p5 }
 0x58f   : > { %p2668_p2 = pneg %p2667_p1 }
 0x590   : > { %p2674_p13 = por %p2673_p8, %p2672_p11 }
 0x592   : > { %p2675_p10 = pnand %p2674_p13, %p2668_p2 }
 0x594   : > { %2678 = shalt.err (!%p2675_p10)
}
 0x595   : > { %s2787_s1 = smov 128   ;;  %s2788_s28 = smov 8  }
 0x596   : > { %2412 = dma.vmem_to_hbm [thread:$0]  (%p3610_p12), %s3472_s19, 2048, %s3469_s30, %s1760_s10, %s2787_s1, %s2787_s1, %s2788_s28  }
 0x597 PF: > { %s3611_s4 = sld [smem:[#allocation17_spill]]  ;;  %s3612_s5 = sld [smem:[#allocation27_spill]] }
 0x598   : > { %p2434_p3 = scmp.ge.s32.totalorder %s2773_s22, 2 }
 0x59d   : > { %s1788_s13 = sand.u32 1, %s3611_s4   ;;  %p3613_p9 = scmp.ne.s32.totalorder %s3612_s5, 0 }
 0x59e   : > { %s1789_s26 = scalar_lea.sflag [#allocation6], %s1788_s13 }
 0x59f   : > { %p2425_p0 = pnand %p2434_p3, %p3613_p9 }
 0x5a1   : > { %2732 = dma.done.wait (!%p2425_p0), %s1789_s26, 2048  }
 0x5a2   : > { %2734 = vsyncadd (!%p2425_p0), %s1789_s26, 4294965248  ;;  %s28_s22 = sadd.s32 1, %s2773_s22   ;;  %s3614_s11 = sld [smem:[#allocation24_spill]] }
 0x5a3   : > { %p25_p4 = scmp.ge.s32.totalorder %s28_s22, 6   ;;  %s3615_s18 = sld [smem:[#allocation25_spill]] }
 0x5a4   : > { %s3616_s29 = sld [smem:[#allocation20_spill]]  ;;  %s3617_s30 = sld [smem:[#allocation21_spill]] }
 0x5a5   : > { %s3618_s13 = smov %s2741_s14  ;;  %s3619_s14 = smov %s2745_s15 }
 0x5a6   : > { %s3621_s16 = smov %s2753_s17  ;;  %s3624_s19 = smov %s2769_s21 }
 0x5a7   :  { %27 = sbr.rel (!%p25_p4) target bundleno = 19 (0x13), region = 183 }
 0x5a8   : > { %s3620_s15 = smov %s3614_s11 }
 0x5a9   : > { %s3622_s17 = smov %s3615_s18  ;;  %s3623_s18 = smov %s2765_s20 }
 0x5aa   : > { %s3625_s20 = smov %s3616_s29  ;;  %s3626_s21 = smov %s3617_s30 }
 0x5ae   :  { %1794 = vsyncpa [#allocation5], 1 }
 0x5af   :  { %1796 = vsyncpa [#allocation5 + $0x1], 1 }
 0x5b0   :  { %1797 = vsyncpa [#allocation8], 1 }
 0x5b1   :  { %1798 = vsyncpa [#allocation11], 1 }
 0x5b2   :  { %1799 = vsyncpa [#allocation6], 1 }
 0x5b3   :  { %1801 = vsyncpa [#allocation6 + $0x1], 1 }

</bundles_post_ra>
